<compile_context>
chip_gen: v7x
topology: tpu7x:2x2x1
jax: 0.10.0
libtpu: 0.0.40
codegen_flags: <defaults>
</compile_context>

<pallas_src>
import functools
import math

import jax
import jax.numpy as jnp
from jax import lax
from jax.experimental import pallas as pl
from jax.experimental.pallas import tpu as pltpu

# Tile targets: 256 fills the v6e/v7x 256-wide MXU and amortizes the ~0.35us
# grid-step overhead (drop block_q to 128 when tuning for v5e's 4x128^2 MXU).
_DEFAULT_BLOCK_Q = 256
_DEFAULT_BLOCK_K = 512


def _cdiv(a, b):
    return -(-a // b)


def _pad_axis(x, axis, new_size, value=0):
    pad = new_size - x.shape[axis]
    if pad == 0:
        return x
    widths = [(0, 0)] * x.ndim
    widths[axis] = (0, pad)
    return jnp.pad(x, widths, constant_values=value)


# ---------------------------------------------------------------------------
# Fused kernel: flash attention + out-proj + residual + LayerNorm epilogue
# ---------------------------------------------------------------------------
def _fused_mha_kernel(q_ref, k_ref, v_ref, mask_ref, res_ref, w_ref, b_ref,
                      g_ref, beta_ref, out_ref, *rest, scale, eps,
                      return_attn, approx_recip):
    if return_attn:
        attn_ref, m_sc, l_sc, acc_sc = rest
    else:
        attn_ref = None
        m_sc, l_sc, acc_sc = rest

    ki = pl.program_id(2)

    # ---- init online-softmax accumulators on the first key block ----------
    @pl.when(ki == 0)
    def _init():
        m_sc[...] = jnp.full(m_sc.shape, -jnp.inf, m_sc.dtype)
        l_sc[...] = jnp.zeros(l_sc.shape, l_sc.dtype)
        acc_sc[...] = jnp.zeros(acc_sc.shape, acc_sc.dtype)

    q = q_ref[0]                      # (H, TQ, d_k)
    k = k_ref[0]                      # (H, TK, d_k)
    v = v_ref[0]                      # (H, TK, d_v)

    # Fold 1/sqrt(d_k) into Q: O(TQ*d_k) multiplies instead of O(TQ*TK).
    q = q * jnp.asarray(scale, dtype=q.dtype)

    # scores[h,i,j] = sum_d q[h,i,d] * k[h,j,d]  — contract d_k directly
    # (no K transpose / XLU); MXU with f32 accumulation.
    scores = lax.dot_general(
        q, k, dimension_numbers=(((2,), (2,)), ((0,), (0,))),
        preferred_element_type=jnp.float32)               # (H, TQ, TK) f32

    # Additive mask bias (one VALU add vs compare+select), shared by all heads.
    # NOTE: for a fully-masked row this yields softmax(scores) instead of
    # PyTorch's uniform 1/Lk — both are degenerate garbage rows.
    bias = mask_ref[0].astype(jnp.float32) * jnp.float32(-1e9)   # (TQ, TK)
    scores = scores + bias[None, :, :]

    # ---- online (flash) softmax update -------------------------------------
    m_prev = m_sc[...]                                    # (H, TQ, 1)
    m_new = jnp.maximum(m_prev, jnp.max(scores, axis=-1, keepdims=True))
    alpha = jnp.exp(m_prev - m_new)
    p = jnp.exp(scores - m_new)                           # (H, TQ, TK) f32
    l_sc[...] = alpha * l_sc[...] + jnp.sum(p, axis=-1, keepdims=True)
    acc_sc[...] = alpha * acc_sc[...] + lax.dot_general(
        p.astype(v.dtype), v,
        dimension_numbers=(((2,), (1,)), ((0,), (0,))),
        preferred_element_type=jnp.float32)               # (H, TQ, d_v)
    m_sc[...] = m_new

    # ---- epilogue on the last key block: normalize, out-proj (+ head concat),
    #      + bias, + residual, LayerNorm — all in VMEM, one HBM write ---------
    @pl.when(ki == pl.num_programs(2) - 1)
    def _finalize():
        denom = l_sc[...]
        if approx_recip:
            inv = pl.reciprocal(denom, approx=True)       # EUP slot (~free)
        else:
            inv = 1.0 / denom                             # exact: attn is user-visible
        ctx = acc_sc[...] * inv                           # (H, TQ, d_v) f32

        # Head-concat folded into the output projection: accumulate the
        # per-head GEMMs ctx[h] @ W_O[h] in f32.  No (TQ, H*d_v) relayout and
        # no masked lane-offset stores.
        w = w_ref[...]                                    # (H, d_v, d_model)
        y = lax.dot_general(ctx[0].astype(w.dtype), w[0],
                            dimension_numbers=(((1,), (0,)), ((), ())),
                            preferred_element_type=jnp.float32)
        for h in range(1, ctx.shape[0]):
            y = y + lax.dot_general(ctx[h].astype(w.dtype), w[h],
                                    dimension_numbers=(((1,), (0,)), ((), ())),
                                    preferred_element_type=jnp.float32)

        y = y + b_ref[...].astype(jnp.float32)            # (TQ, d_model)
        y = y + res_ref[0].astype(jnp.float32)

        # LayerNorm over d_model (PyTorch semantics: biased variance, eps=1e-5).
        mean = jnp.mean(y, axis=-1, keepdims=True)
        yc = y - mean
        var = jnp.mean(yc * yc, axis=-1, keepdims=True)
        inv_std = lax.rsqrt(var + jnp.float32(eps))
        o = (yc * inv_std * g_ref[...].astype(jnp.float32)
             + beta_ref[...].astype(jnp.float32))
        out_ref[0] = o.astype(out_ref.dtype)

        if attn_ref is not None:
            # Single key block is guaranteed on this path, so `p` holds the
            # whole unnormalized row and `inv` the exact global denominator.
            attn_ref[0] = (p * inv).astype(attn_ref.dtype)


# ---------------------------------------------------------------------------
# Wrapper
# ---------------------------------------------------------------------------
def fused_mha_attention(q_s, k_s, v_s, attn_mask, residual, W_O, b_O, gamma,
                        beta, *, block_q=None, block_k=None,
                        return_attn=True, attn_dtype=jnp.float32,
                        compute_dtype=None, eps=1e-5, vmem_limit_bytes=None):
    """Fused SDPA + output projection + residual add + LayerNorm.

    q_s/k_s: [B, H, Lq/Lk, d_k]; v_s: [B, H, Lk, d_v]
    attn_mask: [B, Lq, Lk]  (True / nonzero = masked out; NOT head-broadcast)
    residual:  [B, Lq, d_model];  W_O: [d_model, H*d_v];  b_O/gamma/beta: [d_model]

    Returns (output [B, Lq, d_model], attn [B, H, Lq, Lk] or None).
    """
    B, H, Lq, d_k = q_s.shape
    Lk = k_s.shape[2]
    d_v = v_s.shape[3]
    d_model = residual.shape[-1]
    scale = 1.0 / math.sqrt(d_k)

    # ---- tile selection (pad-to-multiple instead of "one giant tile") ------
    if block_q is None:
        block_q = Lq if Lq <= _DEFAULT_BLOCK_Q else _DEFAULT_BLOCK_Q
    block_q = min(block_q, Lq)
    n_q = _cdiv(Lq, block_q)
    Lq_p = n_q * block_q
    if n_q > 1:
        assert block_q % 8 == 0, "block_q must be a multiple of 8 when tiling Lq"

    if return_attn:
        # Exact softmax rows are a user-visible output; they need the global
        # denominator, so the whole key axis stays in one block here.
        # TODO(synk): two-pass variant (stats pass + normalized-attn pass) for
        # very long Lk with return_attn=True.
        block_k = Lk
    elif block_k is None:
        block_k = Lk if Lk <= _DEFAULT_BLOCK_K else _DEFAULT_BLOCK_K
    block_k = min(block_k, Lk)
    n_k = _cdiv(Lk, block_k)
    Lk_p = n_k * block_k
    if n_k > 1:
        assert block_k % 128 == 0, "block_k must be a multiple of 128 when tiling Lk"

    # ---- one-time host-side layout prep -------------------------------------
    mask8 = attn_mask.astype(jnp.int8)            # 4x less DMA than i32, H-fold less than repeat
    mask8 = _pad_axis(mask8, 2, Lk_p, value=1)    # padded keys -> masked out
    mask8 = _pad_axis(mask8, 1, Lq_p, value=0)    # padded query rows -> sliced off later

    q_s = _pad_axis(q_s, 2, Lq_p)
    k_s = _pad_axis(k_s, 2, Lk_p)
    v_s = _pad_axis(v_s, 2, Lk_p)
    residual_p = _pad_axis(residual, 1, Lq_p)

    # Pre-reshape W_O ONCE (outside the kernel) to (H, d_v, d_model): the kernel
    # then runs a plain ((1,),(0,)) per-head contraction — no in-kernel transpose
    # of the loop-invariant weight and no (TQ, H*d_v) relayout of the context.
    W_Oh = W_O.reshape(d_model, H, d_v).transpose(1, 2, 0)

    if compute_dtype is not None:                 # bf16 MXU operands (f32 accum)
        q_s = q_s.astype(compute_dtype)
        k_s = k_s.astype(compute_dtype)
        v_s = v_s.astype(compute_dtype)
        W_Oh = W_Oh.astype(compute_dtype)

    b_O2 = b_O.reshape(1, d_model).astype(jnp.float32)
    gamma2 = gamma.reshape(1, d_model).astype(jnp.float32)
    beta2 = beta.reshape(1, d_model).astype(jnp.float32)

    out_dtype = residual.dtype

    in_specs = [
        pl.BlockSpec((1, H, block_q, d_k), lambda b, qi, ki: (b, 0, qi, 0)),
        pl.BlockSpec((1, H, block_k, d_k), lambda b, qi, ki: (b, 0, ki, 0)),
        pl.BlockSpec((1, H, block_k, d_v), lambda b, qi, ki: (b, 0, ki, 0)),
        pl.BlockSpec((1, block_q, block_k), lambda b, qi, ki: (b, qi, ki)),
        pl.BlockSpec((1, block_q, d_model), lambda b, qi, ki: (b, qi, 0)),
        pl.BlockSpec((H, d_v, d_model), lambda b, qi, ki: (0, 0, 0)),   # resident
        pl.BlockSpec((1, d_model), lambda b, qi, ki: (0, 0)),
        pl.BlockSpec((1, d_model), lambda b, qi, ki: (0, 0)),
        pl.BlockSpec((1, d_model), lambda b, qi, ki: (0, 0)),
    ]
    out_shape = [jax.ShapeDtypeStruct((B, Lq_p, d_model), out_dtype)]
    out_specs = [pl.BlockSpec((1, block_q, d_model), lambda b, qi, ki: (b, qi, 0))]
    if return_attn:
        out_shape.append(jax.ShapeDtypeStruct((B, H, Lq_p, Lk_p), attn_dtype))
        out_specs.append(
            pl.BlockSpec((1, H, block_q, Lk_p), lambda b, qi, ki: (b, 0, qi, 0)))

    scratch_shapes = [
        pltpu.VMEM((H, block_q, 1), jnp.float32),     # running max m
        pltpu.VMEM((H, block_q, 1), jnp.float32),     # running denom l
        pltpu.VMEM((H, block_q, d_v), jnp.float32),   # running context acc
    ]

    itemsize = jnp.dtype(q_s.dtype).itemsize
    bytes_accessed = ((q_s.size + k_s.size + v_s.size) * itemsize + mask8.size
                      + residual_p.size * 4
                      + W_Oh.size * jnp.dtype(W_Oh.dtype).itemsize
                      + B * Lq_p * d_model * jnp.dtype(out_dtype).itemsize)
    if return_attn:
        bytes_accessed += B * H * Lq_p * Lk_p * jnp.dtype(attn_dtype).itemsize
    cost = pl.CostEstimate(
        flops=(2 * B * H * Lq_p * Lk_p * (d_k + d_v)
               + 2 * B * Lq_p * H * d_v * d_model),
        transcendentals=B * H * Lq_p * Lk_p,
        bytes_accessed=int(bytes_accessed))

    outs = pl.pallas_call(
        functools.partial(_fused_mha_kernel, scale=scale, eps=eps,
                          return_attn=return_attn,
                          approx_recip=not return_attn),
        out_shape=tuple(out_shape),
        grid_spec=pltpu.PrefetchScalarGridSpec(
            num_scalar_prefetch=0,
            grid=(B, n_q, n_k),
            in_specs=in_specs,
            out_specs=tuple(out_specs),
            scratch_shapes=scratch_shapes,
        ),
        compiler_params=pltpu.CompilerParams(
            # batch / q-tile axes are independent -> "parallel" (lets v7x split
            # the B*n_q product across its two TensorCores); the key axis carries
            # the online-softmax accumulators -> "arbitrary".
            dimension_semantics=("parallel", "parallel", "arbitrary"),
            # Default scoped VMEM is safe at these block sizes on every
            # generation; raise (e.g. 64<<20) for bigger block_q on v5e/v6e,
            # keep headroom for v7x's 64 MiB physical VMEM.
            vmem_limit_bytes=vmem_limit_bytes),
        cost_estimate=cost,
    )(q_s, k_s, v_s, mask8, residual_p, W_Oh, b_O2, gamma2, beta2)

    if return_attn:
        out, attn = outs
        return out[:, :Lq], attn[:, :, :Lq, :Lk]
    out = outs[0] if isinstance(outs, (tuple, list)) else outs
    return out[:, :Lq], None


# ---------------------------------------------------------------------------
# Full MultiHeadAttention forward (MHA + Add&Norm)
# ---------------------------------------------------------------------------
def multi_head_attention(Q, K, V, attn_mask, params, *, n_heads, d_k, d_v,
                         return_attn=True, attn_dtype=jnp.float32,
                         compute_dtype=None, block_q=None, block_k=None):
    """Q: [B,Lq,d_model], K/V: [B,Lk,d_model], attn_mask: [B,Lq,Lk] (True=masked).

    Returns (output [B,Lq,d_model], attn [B,n_heads,Lq,Lk] or None)."""
    residual = Q
    B, Lq, d_model = Q.shape
    Lk = K.shape[1]

    # Input projections: plain XLA GEMMs (already MXU-optimal; nothing to fuse).
    q_s = (Q @ params["W_Q"].T + params["b_Q"]).reshape(
        B, Lq, n_heads, d_k).transpose(0, 2, 1, 3)
    k_s = (K @ params["W_K"].T + params["b_K"]).reshape(
        B, Lk, n_heads, d_k).transpose(0, 2, 1, 3)
    v_s = (V @ params["W_V"].T + params["b_V"]).reshape(
        B, Lk, n_heads, d_v).transpose(0, 2, 1, 3)

    return fused_mha_attention(
        q_s, k_s, v_s, attn_mask, residual,
        params["W_O"], params["b_O"], params["gamma"], params["beta"],
        return_attn=return_attn, attn_dtype=attn_dtype,
        compute_dtype=compute_dtype, block_q=block_q, block_k=block_k)


# ---------------------------------------------------------------------------
# Pure-JAX reference (mirrors the PyTorch module exactly)
# ---------------------------------------------------------------------------
def _reference_mha(Q, K, V, attn_mask, params, *, n_heads, d_k, d_v, eps=1e-5):
    B, Lq, d_model = Q.shape
    Lk = K.shape[1]
    q_s = (Q @ params["W_Q"].T + params["b_Q"]).reshape(
        B, Lq, n_heads, d_k).transpose(0, 2, 1, 3)
    k_s = (K @ params["W_K"].T + params["b_K"]).reshape(
        B, Lk, n_heads, d_k).transpose(0, 2, 1, 3)
    v_s = (V @ params["W_V"].T + params["b_V"]).reshape(
        B, Lk, n_heads, d_v).transpose(0, 2, 1, 3)

    scores = jnp.einsum("bhqd,bhkd->bhqk", q_s, k_s).astype(jnp.float32)
    scores = scores / jnp.sqrt(jnp.float32(d_k))
    scores = jnp.where(attn_mask[:, None, :, :], jnp.float32(-1e9), scores)
    attn = jax.nn.softmax(scores, axis=-1)
    ctx = jnp.einsum("bhqk,bhkd->bhqd", attn, v_s.astype(jnp.float32))
    ctx = ctx.transpose(0, 2, 1, 3).reshape(B, Lq, n_heads * d_v)

    y = ctx @ params["W_O"].T.astype(jnp.float32) + params["b_O"]
    y = y + Q
    mean = jnp.mean(y, axis=-1, keepdims=True)
    var = jnp.mean((y - mean) ** 2, axis=-1, keepdims=True)
    out = (y - mean) / jnp.sqrt(var + eps) * params["gamma"] + params["beta"]
    return out.astype(Q.dtype), attn


if __name__ == "__main__":
    def init_linear(k, out_dim, in_dim):
        kw, kb = jax.random.split(k)
        w = 0.1 * jax.random.normal(kw, (out_dim, in_dim), dtype=jnp.float32)
        b = 0.1 * jax.random.normal(kb, (out_dim,), dtype=jnp.float32)
        return w, b

    def make_params(keys, n_heads, d_k, d_v, d_model):
        W_Q, b_Q = init_linear(keys[1], n_heads * d_k, d_model)
        W_K, b_K = init_linear(keys[2], n_heads * d_k, d_model)
        W_V, b_V = init_linear(keys[3], n_heads * d_v, d_model)
        W_O, b_O = init_linear(keys[4], d_model, n_heads * d_v)
        gamma = 1.0 + 0.1 * jax.random.normal(keys[5], (d_model,), jnp.float32)
        beta = 0.1 * jax.random.normal(keys[6], (d_model,), jnp.float32)
        return dict(W_Q=W_Q, b_Q=b_Q, W_K=W_K, b_K=b_K, W_V=W_V, b_V=b_V,
                    W_O=W_O, b_O=b_O, gamma=gamma, beta=beta)

    # ---------------- Test 1: module parity (returns attn), f32 -------------
    B, L, d_model, n_heads, d_k, d_v = 2, 8, 32, 4, 16, 16
    keys = jax.random.split(jax.random.PRNGKey(0), 8)
    x = jax.random.normal(keys[0], (B, L, d_model), dtype=jnp.float32)
    params = make_params(keys, n_heads, d_k, d_v, d_model)

    lens = jnp.array([L, L - 2])
    pad = jnp.arange(L)[None, :] >= lens[:, None]                  # (B, Lk)
    attn_mask = jnp.broadcast_to(pad[:, None, :], (B, L, L))       # (B, Lq, Lk)

    out, attn = multi_head_attention(x, x, x, attn_mask, params,
                                     n_heads=n_heads, d_k=d_k, d_v=d_v)
    jax.block_until_ready((out, attn))

    out_ref, attn_ref = _reference_mha(x, x, x, attn_mask, params,
                                       n_heads=n_heads, d_k=d_k, d_v=d_v)
    assert out.shape == (B, L, d_model)
    assert attn.shape == (B, n_heads, L, L)
    assert jnp.allclose(attn, attn_ref, atol=2e-3, rtol=2e-3)
    assert jnp.allclose(out, out_ref, atol=2e-3, rtol=2e-3)

    # --- Test 2: flash path (Lk-tiled online softmax) + ragged-size padding --
    B2, L2, dm2, nh2, dk2, dv2 = 2, 320, 64, 4, 32, 32
    keys2 = jax.random.split(jax.random.PRNGKey(1), 8)
    x2 = jax.random.normal(keys2[0], (B2, L2, dm2), dtype=jnp.float32)
    params2 = make_params(keys2, nh2, dk2, dv2, dm2)
    lens2 = jnp.array([L2, 200])
    pad2 = jnp.arange(L2)[None, :] >= lens2[:, None]
    attn_mask2 = jnp.broadcast_to(pad2[:, None, :], (B2, L2, L2))

    out2, _ = multi_head_attention(x2, x2, x2, attn_mask2, params2,
                                   n_heads=nh2, d_k=dk2, d_v=dv2,
                                   return_attn=False, block_k=128)
    jax.block_until_ready(out2)
    out2_ref, _ = _reference_mha(x2, x2, x2, attn_mask2, params2,
                                 n_heads=nh2, d_k=dk2, d_v=dv2)
    assert out2.shape == (B2, L2, dm2)
    assert jnp.allclose(out2, out2_ref, atol=5e-3, rtol=5e-3)

    # --- Test 3: bf16 MXU operands (f32 accumulation), loose tolerance -------
    out3, _ = multi_head_attention(x2, x2, x2, attn_mask2, params2,
                                   n_heads=nh2, d_k=dk2, d_v=dv2,
                                   return_attn=False, block_k=128,
                                   compute_dtype=jnp.bfloat16)
    jax.block_until_ready(out3)
    assert jnp.allclose(out3, out2_ref, atol=1e-1, rtol=1e-1)

    print("KERNEL_OK")
</pallas_src>

<mosaic_0001>
module attributes {stable_mosaic.version = 11 : i64} {
  func.func @_fused_mha_kernel(%arg0: i32, %arg1: i32, %arg2: i32, %arg3: memref<1x4x8x16xf32, #tpu.memory_space<vmem>>, %arg4: memref<1x4x8x16xf32, #tpu.memory_space<vmem>>, %arg5: memref<1x4x8x16xf32, #tpu.memory_space<vmem>>, %arg6: memref<1x8x8xi8, #tpu.memory_space<vmem>>, %arg7: memref<1x8x32xf32, #tpu.memory_space<vmem>>, %arg8: memref<4x16x32xf32, #tpu.memory_space<vmem>>, %arg9: memref<1x32xf32, #tpu.memory_space<vmem>>, %arg10: memref<1x32xf32, #tpu.memory_space<vmem>>, %arg11: memref<1x32xf32, #tpu.memory_space<vmem>>, %arg12: memref<1x8x32xf32, #tpu.memory_space<vmem>>, %arg13: memref<1x4x8x8xf32, #tpu.memory_space<vmem>>, %arg14: memref<4x8x1xf32, #tpu.memory_space<vmem>>, %arg15: memref<4x8x1xf32, #tpu.memory_space<vmem>>, %arg16: memref<4x8x16xf32, #tpu.memory_space<vmem>>) attributes {dimension_semantics = [#tpu.dimension_semantics<parallel>, #tpu.dimension_semantics<parallel>, #tpu.dimension_semantics<arbitrary>], iteration_bounds = array<i64: 2, 1, 1>, scalar_prefetch = 0 : i64, scratch_operands = 3 : i64, tpu.core_type = #tpu.core_type<tc>, window_params = [{transform_indices = @transform_0, window_bounds = array<i64: 1, 4, 8, 16>}, {transform_indices = @transform_1, window_bounds = array<i64: 1, 4, 8, 16>}, {transform_indices = @transform_2, window_bounds = array<i64: 1, 4, 8, 16>}, {transform_indices = @transform_3, window_bounds = array<i64: 1, 8, 8>}, {transform_indices = @transform_4, window_bounds = array<i64: 1, 8, 32>}, {pipeline_mode = #tpu.pipeline_mode<synchronous>, transform_indices = @transform_5, window_bounds = array<i64: 4, 16, 32>}, {pipeline_mode = #tpu.pipeline_mode<synchronous>, transform_indices = @transform_6, window_bounds = array<i64: 1, 32>}, {pipeline_mode = #tpu.pipeline_mode<synchronous>, transform_indices = @transform_7, window_bounds = array<i64: 1, 32>}, {pipeline_mode = #tpu.pipeline_mode<synchronous>, transform_indices = @transform_8, window_bounds = array<i64: 1, 32>}, {transform_indices = @transform_9, window_bounds = array<i64: 1, 8, 32>}, {transform_indices = @transform_10, window_bounds = array<i64: 1, 4, 8, 8>}]} {
    %c0_i32 = arith.constant 0 : i32
    %0 = arith.cmpi eq, %arg2, %c0_i32 : i32
    %1 = arith.extui %0 : i1 to i32
    %c0_i32_0 = arith.constant 0 : i32
    %2 = arith.cmpi ne, %1, %c0_i32_0 : i32
    scf.if %2 {
      %cst_40 = arith.constant 0xFF800000 : f32
      %45 = vector.broadcast %cst_40 : f32 to vector<4x8x1xf32>
      %c0_41 = arith.constant 0 : index
      %c0_42 = arith.constant 0 : index
      %c0_43 = arith.constant 0 : index
      %46 = vector.load %arg14[%c0_41, %c0_42, %c0_43] : memref<4x8x1xf32, #tpu.memory_space<vmem>>, vector<4x8x1xf32>
      tpu.vector_store %arg14[%c0_41, %c0_42, %c0_43], %45 {strides = array<i32>} : memref<4x8x1xf32, #tpu.memory_space<vmem>>, vector<4x8x1xf32>,
      %cst_44 = arith.constant 0.000000e+00 : f32
      %47 = vector.broadcast %cst_44 : f32 to vector<4x8x1xf32>
      %c0_45 = arith.constant 0 : index
      %c0_46 = arith.constant 0 : index
      %c0_47 = arith.constant 0 : index
      %48 = vector.load %arg15[%c0_45, %c0_46, %c0_47] : memref<4x8x1xf32, #tpu.memory_space<vmem>>, vector<4x8x1xf32>
      tpu.vector_store %arg15[%c0_45, %c0_46, %c0_47], %47 {strides = array<i32>} : memref<4x8x1xf32, #tpu.memory_space<vmem>>, vector<4x8x1xf32>,
      %cst_48 = arith.constant 0.000000e+00 : f32
      %49 = vector.broadcast %cst_48 : f32 to vector<4x8x16xf32>
      %c0_49 = arith.constant 0 : index
      %c0_50 = arith.constant 0 : index
      %c0_51 = arith.constant 0 : index
      %50 = vector.load %arg16[%c0_49, %c0_50, %c0_51] : memref<4x8x16xf32, #tpu.memory_space<vmem>>, vector<4x8x16xf32>
      tpu.vector_store %arg16[%c0_49, %c0_50, %c0_51], %49 {strides = array<i32>} : memref<4x8x16xf32, #tpu.memory_space<vmem>>, vector<4x8x16xf32>,
    } else {
    }
    %c0 = arith.constant 0 : index
    %c0_1 = arith.constant 0 : index
    %c0_2 = arith.constant 0 : index
    %c0_3 = arith.constant 0 : index
    %3 = vector.load %arg3[%c0, %c0_1, %c0_2, %c0_3] : memref<1x4x8x16xf32, #tpu.memory_space<vmem>>, vector<1x4x8x16xf32>
    %4 = vector.shape_cast %3 : vector<1x4x8x16xf32> to vector<4x8x16xf32>
    %c0_4 = arith.constant 0 : index
    %c0_5 = arith.constant 0 : index
    %c0_6 = arith.constant 0 : index
    %c0_7 = arith.constant 0 : index
    %5 = vector.load %arg4[%c0_4, %c0_5, %c0_6, %c0_7] : memref<1x4x8x16xf32, #tpu.memory_space<vmem>>, vector<1x4x8x16xf32>
    %6 = vector.shape_cast %5 : vector<1x4x8x16xf32> to vector<4x8x16xf32>
    %c0_8 = arith.constant 0 : index
    %c0_9 = arith.constant 0 : index
    %c0_10 = arith.constant 0 : index
    %c0_11 = arith.constant 0 : index
    %7 = vector.load %arg5[%c0_8, %c0_9, %c0_10, %c0_11] : memref<1x4x8x16xf32, #tpu.memory_space<vmem>>, vector<1x4x8x16xf32>
    %8 = vector.shape_cast %7 : vector<1x4x8x16xf32> to vector<4x8x16xf32>
    %cst = arith.constant 2.500000e-01 : f32
    %9 = vector.broadcast %cst : f32 to vector<4x8x16xf32>
    %10 = arith.mulf %4, %9 : vector<4x8x16xf32>
    %cst_12 = arith.constant dense<0.000000e+00> : vector<4x8x8xf32>
    %11 = tpu.matmul %10, %6, %cst_12 {dimension_numbers = #tpu.dot_dimension_numbers<[2], [2], [1], [1], [0, 0, 0, 1, 1, 1], [0], [0]>} : vector<4x8x16xf32>, vector<4x8x16xf32>, vector<4x8x8xf32> -> vector<4x8x8xf32>
    %c0_13 = arith.constant 0 : index
    %c0_14 = arith.constant 0 : index
    %c0_15 = arith.constant 0 : index
    %12 = vector.load %arg6[%c0_13, %c0_14, %c0_15] : memref<1x8x8xi8, #tpu.memory_space<vmem>>, vector<1x8x8xi8>
    %13 = vector.shape_cast %12 : vector<1x8x8xi8> to vector<8x8xi8>
    %14 = arith.sitofp %13 : vector<8x8xi8> to vector<8x8xf32>
    %cst_16 = arith.constant -1.000000e+09 : f32
    %15 = vector.broadcast %cst_16 : f32 to vector<8x8xf32>
    %16 = arith.mulf %14, %15 : vector<8x8xf32>
    %17 = vector.shape_cast %16 : vector<8x8xf32> to vector<1x8x8xf32>
    %18 = vector.broadcast %17 : vector<1x8x8xf32> to vector<4x8x8xf32>
    %19 = arith.addf %11, %18 : vector<4x8x8xf32>
    %c0_17 = arith.constant 0 : index
    %c0_18 = arith.constant 0 : index
    %c0_19 = arith.constant 0 : index
    %20 = vector.load %arg14[%c0_17, %c0_18, %c0_19] : memref<4x8x1xf32, #tpu.memory_space<vmem>>, vector<4x8x1xf32>
    %cst_20 = arith.constant dense<0xFF800000> : vector<4x8xf32>
    %21 = vector.multi_reduction <maximumf>, %19, %cst_20 [2] : vector<4x8x8xf32> to vector<4x8xf32>
    %22 = vector.shape_cast %21 : vector<4x8xf32> to vector<4x8x1xf32>
    %23 = arith.maximumf %20, %22 : vector<4x8x1xf32>
    %24 = arith.subf %20, %23 : vector<4x8x1xf32>
    %25 = math.exp %24 : vector<4x8x1xf32>
    %26 = vector.broadcast %23 : vector<4x8x1xf32> to vector<4x8x8xf32>
    %27 = arith.subf %19, %26 : vector<4x8x8xf32>
    %28 = math.exp %27 : vector<4x8x8xf32>
    %c0_21 = arith.constant 0 : index
    %c0_22 = arith.constant 0 : index
    %c0_23 = arith.constant 0 : index
    %29 = vector.load %arg15[%c0_21, %c0_22, %c0_23] : memref<4x8x1xf32, #tpu.memory_space<vmem>>, vector<4x8x1xf32>
    %30 = arith.mulf %25, %29 : vector<4x8x1xf32>
    %cst_24 = arith.constant dense<0.000000e+00> : vector<4x8xf32>
    %31 = vector.multi_reduction <add>, %28, %cst_24 [2] : vector<4x8x8xf32> to vector<4x8xf32>
    %32 = vector.shape_cast %31 : vector<4x8xf32> to vector<4x8x1xf32>
    %33 = arith.addf %30, %32 : vector<4x8x1xf32>
    %c0_25 = arith.constant 0 : index
    %c0_26 = arith.constant 0 : index
    %c0_27 = arith.constant 0 : index
    %34 = vector.load %arg15[%c0_25, %c0_26, %c0_27] : memref<4x8x1xf32, #tpu.memory_space<vmem>>, vector<4x8x1xf32>
    tpu.vector_store %arg15[%c0_25, %c0_26, %c0_27], %33 {strides = array<i32>} : memref<4x8x1xf32, #tpu.memory_space<vmem>>, vector<4x8x1xf32>,
    %c0_28 = arith.constant 0 : index
    %c0_29 = arith.constant 0 : index
    %c0_30 = arith.constant 0 : index
    %35 = vector.load %arg16[%c0_28, %c0_29, %c0_30] : memref<4x8x16xf32, #tpu.memory_space<vmem>>, vector<4x8x16xf32>
    %36 = vector.broadcast %25 : vector<4x8x1xf32> to vector<4x8x16xf32>
    %37 = arith.mulf %36, %35 : vector<4x8x16xf32>
    %cst_31 = arith.constant dense<0.000000e+00> : vector<4x8x16xf32>
    %38 = tpu.matmul %28, %8, %cst_31 {dimension_numbers = #tpu.dot_dimension_numbers<[2], [1], [1], [2], [0, 0, 0, 1, 1, 2], [0], [0]>} : vector<4x8x8xf32>, vector<4x8x16xf32>, vector<4x8x16xf32> -> vector<4x8x16xf32>
    %39 = arith.addf %37, %38 : vector<4x8x16xf32>
    %c0_32 = arith.constant 0 : index
    %c0_33 = arith.constant 0 : index
    %c0_34 = arith.constant 0 : index
    %40 = vector.load %arg16[%c0_32, %c0_33, %c0_34] : memref<4x8x16xf32, #tpu.memory_space<vmem>>, vector<4x8x16xf32>
    tpu.vector_store %arg16[%c0_32, %c0_33, %c0_34], %39 {strides = array<i32>} : memref<4x8x16xf32, #tpu.memory_space<vmem>>, vector<4x8x16xf32>,
    %c0_35 = arith.constant 0 : index
    %c0_36 = arith.constant 0 : index
    %c0_37 = arith.constant 0 : index
    %41 = vector.load %arg14[%c0_35, %c0_36, %c0_37] : memref<4x8x1xf32, #tpu.memory_space<vmem>>, vector<4x8x1xf32>
    tpu.vector_store %arg14[%c0_35, %c0_36, %c0_37], %23 {strides = array<i32>} : memref<4x8x1xf32, #tpu.memory_space<vmem>>, vector<4x8x1xf32>,
    %c0_i32_38 = arith.constant 0 : i32
    %42 = arith.cmpi eq, %arg2, %c0_i32_38 : i32
    %43 = arith.extui %42 : i1 to i32
    %c0_i32_39 = arith.constant 0 : i32
    %44 = arith.cmpi ne, %43, %c0_i32_39 : i32
    scf.if %44 {
      %c0_40 = arith.constant 0 : index
      %c0_41 = arith.constant 0 : index
      %c0_42 = arith.constant 0 : index
      %45 = vector.load %arg15[%c0_40, %c0_41, %c0_42] : memref<4x8x1xf32, #tpu.memory_space<vmem>>, vector<4x8x1xf32>
      %cst_43 = arith.constant 1.000000e+00 : f32
      %46 = vector.broadcast %cst_43 : f32 to vector<4x8x1xf32>
      %47 = arith.divf %46, %45 : vector<4x8x1xf32>
      %c0_44 = arith.constant 0 : index
      %c0_45 = arith.constant 0 : index
      %c0_46 = arith.constant 0 : index
      %48 = vector.load %arg16[%c0_44, %c0_45, %c0_46] : memref<4x8x16xf32, #tpu.memory_space<vmem>>, vector<4x8x16xf32>
      %49 = vector.broadcast %47 : vector<4x8x1xf32> to vector<4x8x16xf32>
      %50 = arith.mulf %48, %49 : vector<4x8x16xf32>
      %c0_47 = arith.constant 0 : index
      %c0_48 = arith.constant 0 : index
      %c0_49 = arith.constant 0 : index
      %51 = vector.load %arg8[%c0_47, %c0_48, %c0_49] : memref<4x16x32xf32, #tpu.memory_space<vmem>>, vector<4x16x32xf32>
      %52 = vector.extract_strided_slice %50 {offsets = [0, 0, 0], sizes = [1, 8, 16], strides = [1, 1, 1]} : vector<4x8x16xf32> to vector<1x8x16xf32>
      %53 = vector.shape_cast %52 : vector<1x8x16xf32> to vector<8x16xf32>
      %54 = vector.extract_strided_slice %51 {offsets = [0, 0, 0], sizes = [1, 16, 32], strides = [1, 1, 1]} : vector<4x16x32xf32> to vector<1x16x32xf32>
      %55 = vector.shape_cast %54 : vector<1x16x32xf32> to vector<16x32xf32>
      %cst_50 = arith.constant dense<0.000000e+00> : vector<8x32xf32>
      %56 = tpu.matmul %53, %55, %cst_50 {dimension_numbers = #tpu.dot_dimension_numbers<[1], [0], [0], [1], [0, 0, 1, 1], [], []>} : vector<8x16xf32>, vector<16x32xf32>, vector<8x32xf32> -> vector<8x32xf32>
      %57 = vector.extract_strided_slice %50 {offsets = [1, 0, 0], sizes = [1, 8, 16], strides = [1, 1, 1]} : vector<4x8x16xf32> to vector<1x8x16xf32>
      %58 = vector.shape_cast %57 : vector<1x8x16xf32> to vector<8x16xf32>
      %59 = vector.extract_strided_slice %51 {offsets = [1, 0, 0], sizes = [1, 16, 32], strides = [1, 1, 1]} : vector<4x16x32xf32> to vector<1x16x32xf32>
      %60 = vector.shape_cast %59 : vector<1x16x32xf32> to vector<16x32xf32>
      %cst_51 = arith.constant dense<0.000000e+00> : vector<8x32xf32>
      %61 = tpu.matmul %58, %60, %cst_51 {dimension_numbers = #tpu.dot_dimension_numbers<[1], [0], [0], [1], [0, 0, 1, 1], [], []>} : vector<8x16xf32>, vector<16x32xf32>, vector<8x32xf32> -> vector<8x32xf32>
      %62 = arith.addf %56, %61 : vector<8x32xf32>
      %63 = vector.extract_strided_slice %50 {offsets = [2, 0, 0], sizes = [1, 8, 16], strides = [1, 1, 1]} : vector<4x8x16xf32> to vector<1x8x16xf32>
      %64 = vector.shape_cast %63 : vector<1x8x16xf32> to vector<8x16xf32>
      %65 = vector.extract_strided_slice %51 {offsets = [2, 0, 0], sizes = [1, 16, 32], strides = [1, 1, 1]} : vector<4x16x32xf32> to vector<1x16x32xf32>
      %66 = vector.shape_cast %65 : vector<1x16x32xf32> to vector<16x32xf32>
      %cst_52 = arith.constant dense<0.000000e+00> : vector<8x32xf32>
      %67 = tpu.matmul %64, %66, %cst_52 {dimension_numbers = #tpu.dot_dimension_numbers<[1], [0], [0], [1], [0, 0, 1, 1], [], []>} : vector<8x16xf32>, vector<16x32xf32>, vector<8x32xf32> -> vector<8x32xf32>
      %68 = arith.addf %62, %67 : vector<8x32xf32>
      %69 = vector.extract_strided_slice %50 {offsets = [3, 0, 0], sizes = [1, 8, 16], strides = [1, 1, 1]} : vector<4x8x16xf32> to vector<1x8x16xf32>
      %70 = vector.shape_cast %69 : vector<1x8x16xf32> to vector<8x16xf32>
      %71 = vector.extract_strided_slice %51 {offsets = [3, 0, 0], sizes = [1, 16, 32], strides = [1, 1, 1]} : vector<4x16x32xf32> to vector<1x16x32xf32>
      %72 = vector.shape_cast %71 : vector<1x16x32xf32> to vector<16x32xf32>
      %cst_53 = arith.constant dense<0.000000e+00> : vector<8x32xf32>
      %73 = tpu.matmul %70, %72, %cst_53 {dimension_numbers = #tpu.dot_dimension_numbers<[1], [0], [0], [1], [0, 0, 1, 1], [], []>} : vector<8x16xf32>, vector<16x32xf32>, vector<8x32xf32> -> vector<8x32xf32>
      %74 = arith.addf %68, %73 : vector<8x32xf32>
      %c0_54 = arith.constant 0 : index
      %c0_55 = arith.constant 0 : index
      %75 = vector.load %arg9[%c0_54, %c0_55] : memref<1x32xf32, #tpu.memory_space<vmem>>, vector<1x32xf32>
      %76 = vector.broadcast %75 : vector<1x32xf32> to vector<8x32xf32>
      %77 = arith.addf %74, %76 : vector<8x32xf32>
      %c0_56 = arith.constant 0 : index
      %c0_57 = arith.constant 0 : index
      %c0_58 = arith.constant 0 : index
      %78 = vector.load %arg7[%c0_56, %c0_57, %c0_58] : memref<1x8x32xf32, #tpu.memory_space<vmem>>, vector<1x8x32xf32>
      %79 = vector.shape_cast %78 : vector<1x8x32xf32> to vector<8x32xf32>
      %80 = arith.addf %77, %79 : vector<8x32xf32>
      %cst_59 = arith.constant dense<0.000000e+00> : vector<8xf32>
      %81 = vector.multi_reduction <add>, %80, %cst_59 [1] : vector<8x32xf32> to vector<8xf32>
      %82 = vector.shape_cast %81 : vector<8xf32> to vector<8x1xf32>
      %cst_60 = arith.constant 3.200000e+01 : f32
      %83 = vector.broadcast %cst_60 : f32 to vector<8x1xf32>
      %84 = arith.divf %82, %83 : vector<8x1xf32>
      %85 = vector.broadcast %84 : vector<8x1xf32> to vector<8x32xf32>
      %86 = arith.subf %80, %85 : vector<8x32xf32>
      %87 = arith.mulf %86, %86 : vector<8x32xf32>
      %cst_61 = arith.constant dense<0.000000e+00> : vector<8xf32>
      %88 = vector.multi_reduction <add>, %87, %cst_61 [1] : vector<8x32xf32> to vector<8xf32>
      %89 = vector.shape_cast %88 : vector<8xf32> to vector<8x1xf32>
      %cst_62 = arith.constant 3.200000e+01 : f32
      %90 = vector.broadcast %cst_62 : f32 to vector<8x1xf32>
      %91 = arith.divf %89, %90 : vector<8x1xf32>
      %cst_63 = arith.constant 9.99999974E-6 : f32
      %92 = vector.broadcast %cst_63 : f32 to vector<8x1xf32>
      %93 = arith.addf %91, %92 : vector<8x1xf32>
      %94 = math.rsqrt %93 : vector<8x1xf32>
      %95 = vector.broadcast %94 : vector<8x1xf32> to vector<8x32xf32>
      %96 = arith.mulf %86, %95 : vector<8x32xf32>
      %c0_64 = arith.constant 0 : index
      %c0_65 = arith.constant 0 : index
      %97 = vector.load %arg10[%c0_64, %c0_65] : memref<1x32xf32, #tpu.memory_space<vmem>>, vector<1x32xf32>
      %98 = vector.broadcast %97 : vector<1x32xf32> to vector<8x32xf32>
      %99 = arith.mulf %96, %98 : vector<8x32xf32>
      %c0_66 = arith.constant 0 : index
      %c0_67 = arith.constant 0 : index
      %100 = vector.load %arg11[%c0_66, %c0_67] : memref<1x32xf32, #tpu.memory_space<vmem>>, vector<1x32xf32>
      %101 = vector.broadcast %100 : vector<1x32xf32> to vector<8x32xf32>
      %102 = arith.addf %99, %101 : vector<8x32xf32>
      %c0_68 = arith.constant 0 : index
      %c0_69 = arith.constant 0 : index
      %c0_70 = arith.constant 0 : index
      %103 = vector.load %arg12[%c0_68, %c0_69, %c0_70] : memref<1x8x32xf32, #tpu.memory_space<vmem>>, vector<1x8x32xf32>
      %104 = vector.shape_cast %103 : vector<1x8x32xf32> to vector<8x32xf32>
      %105 = vector.shape_cast %102 : vector<8x32xf32> to vector<1x8x32xf32>
      tpu.vector_store %arg12[%c0_68, %c0_69, %c0_70], %105 {strides = array<i32>} : memref<1x8x32xf32, #tpu.memory_space<vmem>>, vector<1x8x32xf32>,
      %106 = vector.broadcast %47 : vector<4x8x1xf32> to vector<4x8x8xf32>
      %107 = arith.mulf %28, %106 : vector<4x8x8xf32>
      %c0_71 = arith.constant 0 : index
      %c0_72 = arith.constant 0 : index
      %c0_73 = arith.constant 0 : index
      %c0_74 = arith.constant 0 : index
      %108 = vector.load %arg13[%c0_71, %c0_72, %c0_73, %c0_74] : memref<1x4x8x8xf32, #tpu.memory_space<vmem>>, vector<1x4x8x8xf32>
      %109 = vector.shape_cast %108 : vector<1x4x8x8xf32> to vector<4x8x8xf32>
      %110 = vector.shape_cast %107 : vector<4x8x8xf32> to vector<1x4x8x8xf32>
      tpu.vector_store %arg13[%c0_71, %c0_72, %c0_73, %c0_74], %110 {strides = array<i32>} : memref<1x4x8x8xf32, #tpu.memory_space<vmem>>, vector<1x4x8x8xf32>,
    } else {
    }
    return
  }
  func.func @transform_0(%arg0: i32, %arg1: i32, %arg2: i32) -> (i32, i32, i32, i32) {
    %c0_i32 = arith.constant 0 : i32
    %c0_i32_0 = arith.constant 0 : i32
    %c0_i32_1 = arith.constant 0 : i32
    return %arg0, %c0_i32, %arg1, %c0_i32_0 : i32, i32, i32, i32
  }
  func.func @transform_1(%arg0: i32, %arg1: i32, %arg2: i32) -> (i32, i32, i32, i32) {
    %c0_i32 = arith.constant 0 : i32
    %c0_i32_0 = arith.constant 0 : i32
    %c0_i32_1 = arith.constant 0 : i32
    return %arg0, %c0_i32, %arg2, %c0_i32_0 : i32, i32, i32, i32
  }
  func.func @transform_2(%arg0: i32, %arg1: i32, %arg2: i32) -> (i32, i32, i32, i32) {
    %c0_i32 = arith.constant 0 : i32
    %c0_i32_0 = arith.constant 0 : i32
    %c0_i32_1 = arith.constant 0 : i32
    return %arg0, %c0_i32, %arg2, %c0_i32_0 : i32, i32, i32, i32
  }
  func.func @transform_3(%arg0: i32, %arg1: i32, %arg2: i32) -> (i32, i32, i32) {
    %c0_i32 = arith.constant 0 : i32
    return %arg0, %arg1, %arg2 : i32, i32, i32
  }
  func.func @transform_4(%arg0: i32, %arg1: i32, %arg2: i32) -> (i32, i32, i32) {
    %c0_i32 = arith.constant 0 : i32
    %c0_i32_0 = arith.constant 0 : i32
    return %arg0, %arg1, %c0_i32 : i32, i32, i32
  }
  func.func @transform_5(%arg0: i32, %arg1: i32, %arg2: i32) -> (i32, i32, i32) {
    %c0_i32 = arith.constant 0 : i32
    %c0_i32_0 = arith.constant 0 : i32
    %c0_i32_1 = arith.constant 0 : i32
    %c0_i32_2 = arith.constant 0 : i32
    return %c0_i32, %c0_i32_0, %c0_i32_1 : i32, i32, i32
  }
  func.func @transform_6(%arg0: i32, %arg1: i32, %arg2: i32) -> (i32, i32) {
    %c0_i32 = arith.constant 0 : i32
    %c0_i32_0 = arith.constant 0 : i32
    %c0_i32_1 = arith.constant 0 : i32
    return %c0_i32, %c0_i32_0 : i32, i32
  }
  func.func @transform_7(%arg0: i32, %arg1: i32, %arg2: i32) -> (i32, i32) {
    %c0_i32 = arith.constant 0 : i32
    %c0_i32_0 = arith.constant 0 : i32
    %c0_i32_1 = arith.constant 0 : i32
    return %c0_i32, %c0_i32_0 : i32, i32
  }
  func.func @transform_8(%arg0: i32, %arg1: i32, %arg2: i32) -> (i32, i32) {
    %c0_i32 = arith.constant 0 : i32
    %c0_i32_0 = arith.constant 0 : i32
    %c0_i32_1 = arith.constant 0 : i32
    return %c0_i32, %c0_i32_0 : i32, i32
  }
  func.func @transform_9(%arg0: i32, %arg1: i32, %arg2: i32) -> (i32, i32, i32) {
    %c0_i32 = arith.constant 0 : i32
    %c0_i32_0 = arith.constant 0 : i32
    return %arg0, %arg1, %c0_i32 : i32, i32, i32
  }
  func.func @transform_10(%arg0: i32, %arg1: i32, %arg2: i32) -> (i32, i32, i32, i32) {
    %c0_i32 = arith.constant 0 : i32
    %c0_i32_0 = arith.constant 0 : i32
    %c0_i32_1 = arith.constant 0 : i32
    return %arg0, %c0_i32, %arg1, %c0_i32_0 : i32, i32, i32, i32
  }
}

</mosaic_0001>

<bundles_post_ra>
// kernel: tpu_custom_call.1
= control target key start
LH: loop header
LB: loop body
LE: loop exit
PB: predicated region body
PF: predicated region fallthrough
CT: control target
= control target key end

     0   :  { %s3218_s0 = inlined_call_operand.hbm [shape: f32[2,4,8,16], index: 0, kind: input, shape index: {}]   ;;  %s3219_s1 = inlined_call_operand.hbm [shape: f32[2,4,8,16], index: 1, kind: input, shape index: {}]   ;;  %s3220_s2 = inlined_call_operand.hbm [shape: f32[2,4,8,16], index: 2, kind: input, shape index: {}]   ;;  %s3221_s3 = inlined_call_operand.vmem [shape: s8[2,8,8], index: 3, kind: input, shape index: {}]   ;;  %s3222_s4 = inlined_call_operand.hbm [shape: f32[2,8,32], index: 4, kind: input, shape index: {}]   ;;  %s3223_s5 = inlined_call_operand.hbm [shape: f32[4,16,32], index: 5, kind: input, shape index: {}]   ;;  %s3224_s6 = inlined_call_operand.vmem [shape: f32[1,32], index: 6, kind: input, shape index: {}]   ;;  %s3225_s7 = inlined_call_operand.vmem [shape: f32[1,32], index: 7, kind: input, shape index: {}]   ;;  %s3226_s8 = inlined_call_operand.vmem [shape: f32[1,32], index: 8, kind: input, shape index: {}]   ;;  %s3227_s9 = inlined_call_operand.hbm [shape: f32[2,8,32], index: 9, kind: output, shape index: {0}]   ;;  %s3228_s10 = inlined_call_operand.hbm [shape: f32[2,4,8,8], index: 10, kind: output, shape index: {1}]  }
   0x1   :  { %3245 = sst [smem:[#allocation28_spill]] %s3219_s1 }
   0x2   :  { %3246 = sst [smem:[#allocation29_spill]] %s3223_s5 }
   0x3   :  { %3247 = sst [smem:[#allocation30_spill]] %s3225_s7 }
   0x4   :  { %3248 = sst [smem:[#allocation31_spill]] %s3226_s8 }
   0x5   :  { %3249 = sst [smem:[#allocation32_spill]] %s3227_s9 }
   0x6   :  { %3250 = sst [smem:[#allocation33_spill]] %s3228_s10 }
   0x7   :  { %16 = vsyncpa [#allocation6], 0 }
   0x8   :  { %18 = vsyncpa [#allocation6 + $0x1], 0 }
   0x9   :  { %19 = vsyncpa [#allocation9], 0 }
   0xa   :  { %21 = vsyncpa [#allocation9 + $0x1], 0 }
   0xb   :  { %22 = vsyncpa [#allocation12], 0 }
   0xc   :  { %24 = vsyncpa [#allocation12 + $0x1], 0 }
   0xd   :  { %25 = vsyncpa [#allocation7], 0 }
   0xe   :  { %27 = vsyncpa [#allocation7 + $0x1], 0 }
   0xf   :  { %28 = vsyncpa [#allocation16], 0 }
  0x10   :  { %30 = vsyncpa [#allocation16 + $0x1], 0  ;;  %s2648_s13 = smov 0   ;;  %s2650_s14 = smov 0  }
  0x11   :  { %s2652_s15 = smov 0   ;;  %s2654_s16 = smov 0  }
  0x12   :  { %s2656_s17 = smov 0   ;;  %s2658_s18 = smov 0  }
  0x13 LB: > { %3251 = sst [smem:[#allocation23_spill]] %s2555_s13  ;;  %s2679_s19 = sadd.s32 4294967295, %s2575_s18   ;;  %s2575_s18 = sphi %s2658_s18, %s36_s18   ;;  %s2571_s17 = sphi %s2656_s17, %s3295_s17   ;;  %s2567_s16 = sphi %s2654_s16, %s3294_s16   ;;  %s2563_s15 = sphi %s2652_s15, %s3290_s15   ;;  %s2559_s14 = sphi %s2650_s14, %s3293_s14   ;;  %s2555_s13 = sphi %s2648_s13, %s3292_s13  }
  0x14   : > { %3252 = sst [smem:[#allocation24_spill]] %s2563_s15  ;;  %s2009_s20 = sadd.s32 4294967294, %s2575_s18  }
  0x15   : > { %p71_p0 = scmp.ne.s32.totalorder %s2563_s15, %s2559_s14  ;;  %p72_p1 = scmp.eq.s32.totalorder %s2575_s18, 0 }
  0x16   : > { %p77_p2 = scmp.ne.s32.totalorder %s2559_s14, %s2555_s13  ;;  %p3232_p3 = scmp.eq.s32.totalorder %s2679_s19, 0 }
  0x17   : > { %p301_p4 = scmp.eq.s32.totalorder %s2679_s19, 1  ;;  %p2690_p5 = por %p72_p1, %p71_p0 }
  0x18   : > { %p307_p6 = scmp.eq.s32.totalorder %s2009_s20, 1  ;;  %p2696_p7 = por %p3232_p3, %p77_p2 }
  0x19   : > { %s3253_s22 = scalar_select %p2690_p5, 1, 0 }
  0x1a   : > { %s3254_s23 = scalar_select %p2696_p7, 1, 0 }
  0x1b   : > { %p2700_p8 = por %p301_p4, %p71_p0  ;;  %p2704_p9 = por %p307_p6, %p77_p2 }
  0x1c   : > { %p2010_p10 = scmp.ge.s32.totalorder %s2575_s18, 1  ;;  %p342_p11 = scmp.lt.s32.totalorder %s2575_s18, 3 }
  0x1d   : > { %s3255_s24 = scalar_select %p2700_p8, 1, 0 }
  0x1e   : > { %s3256_s25 = scalar_select %p2704_p9, 1, 0 }
  0x1f   : > { %p2710_p12 = pnand %p2010_p10, %p342_p11  ;;  %s2577_s27 = smov [#allocation13]  }
  0x20   : > { %3257 = sst [smem:[#allocation25_spill]] %s3256_s25  ;;  %s354_s28 = sshll.u32 %s2577_s27, 4  ;;  %s2714_s28 = int_to_ptr.vmem [resolvable:$true] %s354_s28 }
  0x21   : > { %s3258_s26 = scalar_select %p2710_p12, 1, 0 }
  0x22   : > { %p2187_p13 = pneg %p2710_p12  ;;  %s55_s30 = sadd.s32 1, %s2571_s17 }
  0x23   : > { %s2728_s11 = sand.u32 1, %s2563_s15   ;;  %p2730_p4 = scmp.ge.s32.totalorder %s55_s30, 2 }
  0x24   : > { %p2722_p2 = pnand %p2187_p13, %p3232_p3  ;;  %s3261_s5 = sld [smem:[#allocation29_spill]] }
  0x25   : > { %s3260_s12 = scalar_select %p2730_p4, 1, 0 }
  0x26   : > { %p2303_p10 = pneg %p2722_p2 }
  0x2a   : > { %s2301_s21 = scalar_lea.hbm %s3261_s5, 1024 }
  0x2b   : > { %p2302_p6 = scmp.ne.s32.totalorder %s3261_s5, %s2301_s21  ;;  %p2308_p0 = scmp.lt.u32.totalorder %s2301_s21, %s3261_s5 }
  0x2d   : > { %p2304_p11 = pnand %p2303_p10, %p2302_p6 }
  0x2f   : > { %p2305_p13 = pneg %p2304_p11 }
  0x31   : > { %p2310_p3 = pnand %p2308_p0, %p2305_p13 }
  0x33   : > { %2313 = shalt.err (!%p2310_p3)
}
  0x34   : > { %s2314_s7 = scalar_lea.vmem %s2714_s28, 1024  ;;  %p2322_p7 = scmp.lt.s32.totalorder %s2714_s28, %s2714_s28 }
  0x35   : > { %p2315_p1 = scmp.ne.s32.totalorder %s2714_s28, %s2314_s7  ;;  %p2323_p12 = scmp.lt.s32.totalorder %s2314_s7, %s2314_s7 }
  0x37   : > { %p2317_p9 = pnand %p2315_p1, %p2303_p10  ;;  %p2324_p5 = por %p2323_p12, %p2322_p7 }
  0x39   : > { %p2318_p8 = pneg %p2317_p9 }
  0x3b   : > { %p2325_p4 = pnand %p2324_p5, %p2318_p8 }
  0x3d   : > { %2328 = shalt.err (!%p2325_p4)
}
  0x3e   : > { %s3236_s13 = smov 128   ;;  %s3238_s8 = smov 8  }
  0x3f   : > { %2190 = dma.hbm_to_vmem [thread:$0]  (!%p2722_p2), %s3261_s5, 1024, %s2714_s28, [#allocation12], %s3236_s13, %s3236_s13, %s3238_s8  }
  0x40   : > { %p3262_p3 = scmp.ne.s32.totalorder %s3260_s12, 0  ;;  %s2763_s21 = sshll.u32 %s2728_s11, 5 }
  0x41   : > { %s2766_s25 = sshll.u32 %s2571_s17, 9  ;;  %p3264_p5 = scmp.ne.s32.totalorder %s3253_s22, 0 }
  0x42   : > { %s3297_s30 = smov (%p3262_p3, %s55_s30), 0  ;;  %p3265_p7 = scmp.lt.s32.totalorder %s2575_s18, 2 }
  0x43   : > { %3263 = sst [smem:[#allocation26_spill]] %s3297_s30  ;;  %s59_s20 = ssub.s32 %s2571_s17, %s3297_s30 }
  0x44   : > { %p2774_p8 = pnand %p3265_p7, %p3264_p5  ;;  %p62_p9 = scmp.eq.s32.totalorder %s59_s20, 0 }
  0x45   : > { %s3241_s28 = sand.u32 1, %s2575_s18   ;;  %s3267_s12 = sadd.s32 1, %s2563_s15 }
  0x46   : > { %s3266_s29 = scalar_select %p2774_p8, 1, 0 }
  0x47   : > { %s2782_s27 = scalar_select %p62_p9, %s2563_s15, %s3267_s12  }
  0x48   : > { %s3269_s1 = sld [smem:[#allocation28_spill]]  ;;  %s403_s22 = scalar_lea.vmem [#allocation8], %s2763_s21 }
  0x49   : > { %3268 = sst [smem:[#allocation27_spill]] %s2782_s27  ;;  %s411_s8 = sshll.u32 %s403_s22, 4  ;;  %s2791_s8 = int_to_ptr.vmem [resolvable:$true] %s411_s8 }
  0x4a   : > { %s2795_s5 = scalar_lea.sflag [#allocation9], %s3241_s28  ;;  %p2801_p0 = pneg %p2774_p8 }
  0x4e   : > { %s2788_s13 = scalar_lea.hbm %s3269_s1, %s2766_s25  ;;  %s2334_s22 = scalar_lea.hbm %s3269_s1, 1024 }
  0x4f   : > { %s2329_s20 = scalar_lea.hbm %s2788_s13, 512  ;;  %p2335_p4 = scmp.lt.u32.totalorder %s2788_s13, %s3269_s1 }
  0x50   : > { %p2330_p12 = scmp.ne.s32.totalorder %s2788_s13, %s2329_s20  ;;  %p2336_p6 = scmp.lt.u32.totalorder %s2334_s22, %s2329_s20 }
  0x51   : > { %p2338_p11 = scmp.lt.u32.totalorder %s2329_s20, %s2788_s13 }
  0x52   : > { %p2332_p1 = pnand %p2801_p0, %p2330_p12  ;;  %p2337_p10 = por %p2336_p6, %p2335_p4 }
  0x54   : > { %p2333_p2 = pneg %p2332_p1  ;;  %p2339_p13 = por %p2338_p11, %p2337_p10 }
  0x56   : > { %p2340_p3 = pnand %p2339_p13, %p2333_p2 }
  0x58   : > { %2343 = shalt.err (!%p2340_p3)
}
  0x59   : > { %s2344_s28 = scalar_lea.vmem %s2791_s8, 512  ;;  %s2580_s7 = smov [#allocation8]  }
  0x5a   : > { %p2345_p5 = scmp.ne.s32.totalorder %s2791_s8, %s2344_s28  ;;  %s2349_s9 = sshll.u32 %s2580_s7, 4  ;;  %s2350_s9 = int_to_ptr.vmem [resolvable:$false] %s2349_s9 }
  0x5b   : > { %s2351_s30 = scalar_lea.vmem %s2350_s9, 1024  ;;  %p2352_p12 = scmp.lt.s32.totalorder %s2791_s8, %s2350_s9 }
  0x5c   : > { %p2347_p7 = pnand %p2345_p5, %p2801_p0  ;;  %p2353_p1 = scmp.lt.s32.totalorder %s2351_s30, %s2344_s28 }
  0x5e   : > { %p2348_p9 = pneg %p2347_p7  ;;  %p2354_p4 = por %p2353_p1, %p2352_p12 }
  0x60   : > { %p2355_p6 = pnand %p2354_p4, %p2348_p9 }
  0x62   : > { %2358 = shalt.err (!%p2355_p6)
}
  0x63   : > { %s3271_s27 = smov 8   ;;  %s3272_s20 = smov 128  }
  0x64   : > { %2197 = dma.hbm_to_vmem [thread:$0]  (!%p2774_p8), %s2788_s13, 512, %s2791_s8, %s2795_s5, %s3272_s20, %s3272_s20, %s3271_s27  }
  0x65   : > { %s2832_s28 = scalar_lea.hbm %s3218_s0, %s2766_s25  ;;  %s381_s9 = scalar_lea.vmem [#allocation5], %s2763_s21 }
  0x66   : > { %s389_s30 = sshll.u32 %s381_s9, 4  ;;  %s378_s1 = scalar_lea.sflag [#allocation6], %s2728_s11  ;;  %s2835_s30 = int_to_ptr.vmem [resolvable:$true] %s389_s30 }
  0x67   : > { %s2359_s15 = scalar_lea.hbm %s2832_s28, 512  ;;  %s2364_s22 = scalar_lea.hbm %s3218_s0, 1024 }
  0x68   : > { %p2360_p2 = scmp.ne.s32.totalorder %s2832_s28, %s2359_s15  ;;  %p2365_p13 = scmp.lt.u32.totalorder %s2832_s28, %s3218_s0 }
  0x69   : > { %p2366_p3 = scmp.lt.u32.totalorder %s2364_s22, %s2359_s15  ;;  %p2368_p7 = scmp.lt.u32.totalorder %s2359_s15, %s2832_s28 }
  0x6a   : > { %p2362_p10 = pnand %p2360_p2, %p2801_p0 }
  0x6b   : > { %p2367_p5 = por %p2366_p3, %p2365_p13 }
  0x6c   : > { %p2363_p11 = pneg %p2362_p10 }
  0x6d   : > { %p2369_p9 = por %p2368_p7, %p2367_p5 }
  0x6f   : > { %p2370_p12 = pnand %p2369_p9, %p2363_p11 }
  0x71   : > { %2373 = shalt.err (!%p2370_p12)
}
  0x72   : > { %s2374_s9 = scalar_lea.vmem %s2835_s30, 512  ;;  %s2581_s13 = smov [#allocation5]  }
  0x73   : > { %p2375_p1 = scmp.ne.s32.totalorder %s2835_s30, %s2374_s9  ;;  %s2379_s8 = sshll.u32 %s2581_s13, 4  ;;  %s2380_s8 = int_to_ptr.vmem [resolvable:$false] %s2379_s8 }
  0x74   : > { %s2381_s10 = scalar_lea.vmem %s2380_s8, 1024  ;;  %p2382_p2 = scmp.lt.s32.totalorder %s2835_s30, %s2380_s8 }
  0x75   : > { %p2377_p4 = pnand %p2375_p1, %p2801_p0  ;;  %p2383_p10 = scmp.lt.s32.totalorder %s2381_s10, %s2374_s9 }
  0x77   : > { %p2378_p6 = pneg %p2377_p4  ;;  %p2384_p13 = por %p2383_p10, %p2382_p2 }
  0x79   : > { %p2385_p3 = pnand %p2384_p13, %p2378_p6 }
  0x7b   : > { %2388 = shalt.err (!%p2385_p3)
}
  0x7c   : > { %2194 = dma.hbm_to_vmem [thread:$0]  (!%p2774_p8), %s2832_s28, 512, %s2835_s30, %s378_s1, %s3272_s20, %s3272_s20, %s3271_s27  }
  0x7d   : > { %s2868_s7 = scalar_lea.hbm %s3220_s2, %s2766_s25  ;;  %s425_s9 = scalar_lea.vmem [#allocation10], %s2763_s21 }
  0x7e   : > { %s433_s13 = sshll.u32 %s425_s9, 4  ;;  %s2389_s8 = scalar_lea.hbm %s2868_s7, 512  ;;  %s2871_s13 = int_to_ptr.vmem [resolvable:$true] %s433_s13 }
  0x7f   : > { %p2390_p11 = scmp.ne.s32.totalorder %s2868_s7, %s2389_s8  ;;  %s2394_s28 = scalar_lea.hbm %s3220_s2, 1024 }
  0x80   : > { %p2395_p9 = scmp.lt.u32.totalorder %s2868_s7, %s3220_s2  ;;  %p2396_p12 = scmp.lt.u32.totalorder %s2394_s28, %s2389_s8 }
  0x81   : > { %p2392_p5 = pnand %p2390_p11, %p2801_p0  ;;  %p2398_p4 = scmp.lt.u32.totalorder %s2389_s8, %s2868_s7 }
  0x82   : > { %p2397_p1 = por %p2396_p12, %p2395_p9 }
  0x83   : > { %p2393_p7 = pneg %p2392_p5 }
  0x84   : > { %p2399_p6 = por %p2398_p4, %p2397_p1 }
  0x86   : > { %p2400_p2 = pnand %p2399_p6, %p2393_p7 }
  0x88   : > { %2403 = shalt.err (!%p2400_p2)
}
  0x89   : > { %s2404_s21 = scalar_lea.vmem %s2871_s13, 512  ;;  %s2582_s15 = smov [#allocation10]  }
  0x8a   : > { %p2405_p10 = scmp.ne.s32.totalorder %s2871_s13, %s2404_s21  ;;  %s2409_s22 = sshll.u32 %s2582_s15, 4  ;;  %s2410_s22 = int_to_ptr.vmem [resolvable:$false] %s2409_s22 }
  0x8b   : > { %s2411_s9 = scalar_lea.vmem %s2410_s22, 1024  ;;  %p2412_p11 = scmp.lt.s32.totalorder %s2871_s13, %s2410_s22 }
  0x8c   : > { %p2407_p13 = pnand %p2405_p10, %p2801_p0  ;;  %p2413_p5 = scmp.lt.s32.totalorder %s2411_s9, %s2404_s21 }
  0x8e   : > { %p2408_p3 = pneg %p2407_p13  ;;  %p2414_p9 = por %p2413_p5, %p2412_p11 }
  0x90   : > { %p2415_p12 = pnand %p2414_p9, %p2408_p3 }
  0x92   : > { %2418 = shalt.err (!%p2415_p12)
}
  0x93   : > { %2200 = dma.hbm_to_vmem [thread:$0]  (!%p2774_p8), %s2868_s7, 512, %s2871_s13, %s2795_s5, %s3272_s20, %s3272_s20, %s3271_s27  }
  0x94   : > { %s2022_s8 = sshll.u32 %s2728_s11, 3  ;;  %s2023_s10 = sshll.u32 %s2571_s17, 7 }
  0x95   : > { %s2903_s30 = scalar_lea.hbm %s3222_s4, %s2023_s10  ;;  %s460_s25 = scalar_lea.vmem [#allocation11], %s2022_s8 }
  0x96   : > { %s468_s21 = sshll.u32 %s460_s25, 4  ;;  %s3273_s15 = sand.u32 1, %s2575_s18   ;;  %s469_s21 = int_to_ptr.vmem [resolvable:$true] %s468_s21 }
  0x97   : > { %s457_s22 = scalar_lea.sflag [#allocation12], %s3273_s15  ;;  %s2419_s9 = scalar_lea.hbm %s2903_s30, 128 }
  0x98   : > { %p2420_p7 = scmp.ne.s32.totalorder %s2903_s30, %s2419_s9  ;;  %s2424_s27 = scalar_lea.hbm %s3222_s4, 256 }
  0x99   : > { %p2425_p6 = scmp.lt.u32.totalorder %s2903_s30, %s3222_s4  ;;  %p2426_p2 = scmp.lt.u32.totalorder %s2424_s27, %s2419_s9 }
  0x9a   : > { %p2422_p1 = pnand %p2420_p7, %p2801_p0  ;;  %p2428_p13 = scmp.lt.u32.totalorder %s2419_s9, %s2903_s30 }
  0x9b   : > { %p2427_p10 = por %p2426_p2, %p2425_p6 }
  0x9c   : > { %p2423_p4 = pneg %p2422_p1 }
  0x9d   : > { %p2429_p3 = por %p2428_p13, %p2427_p10 }
  0x9f   : > { %p2430_p11 = pnand %p2429_p3, %p2423_p4 }
  0xa1   : > { %2433 = shalt.err (!%p2430_p11)
}
  0xa2   : > { %s2434_s13 = scalar_lea.vmem %s469_s21, 128  ;;  %s2583_s8 = smov [#allocation11]  }
  0xa3   : > { %p2435_p5 = scmp.ne.s32.totalorder %s469_s21, %s2434_s13  ;;  %s2439_s10 = sshll.u32 %s2583_s8, 4  ;;  %s2440_s10 = int_to_ptr.vmem [resolvable:$false] %s2439_s10 }
  0xa4   : > { %s2441_s1 = scalar_lea.vmem %s2440_s10, 256  ;;  %p2442_p7 = scmp.lt.s32.totalorder %s469_s21, %s2440_s10 }
  0xa5   : > { %p2437_p9 = pnand %p2435_p5, %p2801_p0  ;;  %p2443_p1 = scmp.lt.s32.totalorder %s2441_s1, %s2434_s13 }
  0xa7   : > { %p2438_p12 = pneg %p2437_p9  ;;  %p2444_p8 = por %p2443_p1, %p2442_p7 }
  0xa9   : > { %p2445_p2 = pnand %p2444_p8, %p2438_p12 }
  0xab   : > { %2448 = shalt.err (!%p2445_p2)
}
  0xac   : > { %p3274_p6 = scmp.ne.s32.totalorder %s3266_s29, 0  ;;  %p3275_p4 = scmp.ne.s32.totalorder %s3258_s26, 0 }
  0xad   : > { %s2927_s12 = sand.u32 (!%p3275_p4), 1, %s2559_s14   ;;  %p3276_p8 = scmp.ne.s32.totalorder (!%p3275_p4), %s3254_s23, 0 }
  0xae   : > { %2203 = dma.hbm_to_vmem [thread:$0]  (!%p3274_p6), %s2903_s30, 128, %s469_s21, %s457_s22  }
  0xaf   : > { %477 = sbr.rel (%p3275_p4) target bundleno = 1551 (0x60f), region = 56  ;;  %s2930_s28 = sshll.u32 (!%p3275_p4), %s2927_s12, 5 }
  0xb0   : > { %s480_s25 = scalar_lea.sflag (!%p3275_p4), [#allocation6], %s2927_s12  ;;  %s2934_s15 = scalar_lea.vmem (!%p3275_p4), [#allocation5], %s2930_s28 }
  0xb6   : > { %2530 = dma.done.wait (%p3276_p8), %s480_s25, 512  }
  0xb7   : > { %2532 = vsyncadd (%p3276_p8), %s480_s25, 4294966784  ;;  %s488_s26 = sand.u32 1, %s2679_s19   ;;  %s2942_s30 = scalar_lea.vmem [#allocation8], %s2930_s28 }
  0xb8   : > { %s489_s29 = scalar_lea.sflag [#allocation9], %s488_s26 }
  0xb9   : > { %2534 = dma.done.wait (%p3276_p8), %s489_s29, 1024  }
  0xba   : > { %2536 = vsyncadd (%p3276_p8), %s489_s29, 4294966272  ;;  %s2028_s21 = sshll.u32 %s2927_s12, 3  ;;  %s2950_s22 = scalar_lea.vmem [#allocation10], %s2930_s28 }
  0xbb   : > { %s507_s9 = scalar_lea.sflag [#allocation12], %s488_s26  ;;  %s2954_s5 = scalar_lea.vmem [#allocation11], %s2028_s21 }
  0xbc   : > { %2538 = dma.done.wait (%p3276_p8), %s507_s9, 128  }
  0xbd   : > { %2540 = vsyncadd (%p3276_p8), %s507_s9, 4294967168  ;;  %p3277_p0 = scmp.eq.s32.totalorder %s2679_s19, 0 }
  0xbf   : > { %2542 = dma.done.wait (%p3277_p0), [#allocation12], 1024   ;;  %p3278_p10 = pmov %p3277_p0 }
  0xc0   : > { %vm604_vm0 = vcmask 130048   ;;  %v2584_v0 = vmov 0.0   ;;  %vm2585_vm1 = vmmov 0   ;;  %v613_v1 = vld [vmem:[%s2942_s30] sm:$0xff]  ;;  %v614_v3 = vld [vmem:[%s2942_s30 + $0x8] sm:$0xff]  ;;  %v611_v6 = vld [vmem:[%s2934_s15 + $0x10] sm:$0xff] }
  0xc1   : > { %2544 = vsyncadd (%p3278_p10), [#allocation12], 4294966272  ;;  %2091 = vmatprep.subr.mxu0 %v2584_v0  ;;  %605 = vst.msk [vmem:[#allocation4] sm:$0xff] %vm604_vm0, %v2584_v0  ;;  %2093 = vmatprep.mubr.msk.f32.mxu0 %vm2585_vm1, %v2584_v0  ;;  %v609_v2 = vld [vmem:[%s2934_s15] sm:$0xff]  ;;  %v610_v5 = vld [vmem:[%s2934_s15 + $0x8] sm:$0xff]  ;;  %v623_v11 = vmul.f32 0.25, %v611_v6 }
  0xc2   : > { %606 = vst.msk [vmem:[#allocation4 + $0x8] sm:$0xff] %vm604_vm0, %v2584_v0  ;;  %607 = vst.msk [vmem:[#allocation4 + $0x10] sm:$0xff] %vm604_vm0, %v2584_v0  ;;  %2096 = vmatprep.subr.mxu1 %v2584_v0  ;;  %2098 = vmatprep.mubr.msk.f32.mxu1 %vm2585_vm1, %v2584_v0  ;;  %v621_v4 = vmul.f32 0.25, %v609_v2  ;;  %v622_v7 = vmul.f32 0.25, %v610_v5  ;;  %v615_v8 = vld [vmem:[%s2942_s30 + $0x10] sm:$0xff]  ;;  %v612_v9 = vld [vmem:[%s2934_s15 + $0x18] sm:$0xff] }
  0xc3   : > { %608 = vst.msk [vmem:[#allocation4 + $0x18] sm:$0xff] %vm604_vm0, %v2584_v0  ;;  %2092 = vmatpush3.xpose.msk.msra.mxu0 %vm604_vm0, %v613_v1  ;;  %2097 = vmatpush3.xpose.msk.msra.mxu1 %vm604_vm0, %v614_v3  ;;  %v616_v10 = vld [vmem:[%s2942_s30 + $0x18] sm:$0xff]  ;;  %v624_v12 = vmul.f32 0.25, %v612_v9  ;;  %vm595_vm2 = vcmask 7168   ;;  %v2586_v13 = vmov -inf   ;;  %p581_p13 = scmp.lt.s32.totalorder %s2567_s16, 1 }
  0xc4   : > { %2101 = vmatprep.subr.mxu0 %v2584_v0  ;;  %2106 = vmatprep.subr.mxu1 %v2584_v0  ;;  %596 = vst.msk [vmem:[#allocation2] sm:$0xff] %vm595_vm2, %v2586_v13  ;;  %597 = vst.msk [vmem:[#allocation2 + $0x8] sm:$0xff] %vm595_vm2, %v2586_v13  ;;  %vm938_vm3 = vcmask 64512   ;;  %v2587_v34 = vmov 0   ;;  %v617_v51 = vld [vmem:[%s2950_s22] sm:$0xff]  ;;  %v618_v52 = vld [vmem:[%s2950_s22 + $0x8] sm:$0xff] }
  0xc5   : > { %598 = vst.msk [vmem:[#allocation2 + $0x10] sm:$0xff] %vm595_vm2, %v2586_v13  ;;  %599 = vst.msk [vmem:[#allocation2 + $0x18] sm:$0xff] %vm595_vm2, %v2586_v13  ;;  %s582_s19 = scalar_select %p581_p13, %s2567_s16, 1  ;;  %2273 = vset.pattern.permute.xlu0 %v2587_v34  ;;  %2274 = vset.pattern.permute.xlu1 %v2587_v34  ;;  %v619_v1 = vld [vmem:[%s2950_s22 + $0x10] sm:$0xff]  ;;  %v620_v5 = vld [vmem:[%s2950_s22 + $0x18] sm:$0xff]  ;;  %vm1715_vm4 = vcmask 261120  }
  0xc6   : > { %2094 = vmatmul.mubr.msk.f32.vlgmr.msra.gmra.mrb[0].mxu0 %vm604_vm0, %v621_v4  ;;  %2099 = vmatmul.mubr.msk.f32.vlgmr.msra.gmra.mrb[0].mxu1 %vm604_vm0, %v622_v7  ;;  %600 = vst.msk [vmem:[#allocation3] sm:$0xff] %vm595_vm2, %v2584_v0  ;;  %601 = vst.msk [vmem:[#allocation3 + $0x8] sm:$0xff] %vm595_vm2, %v2584_v0  ;;  %s3096_s7 = scalar_lea.vmem [#allocation15], %s2930_s28  ;;  %s2062_s1 = sshll.u32 %s2567_s16, 9 }
  0xc7   : > { %2102 = vmatpush3.xpose.msk.msra.mxu0 %vm604_vm0, %v615_v8  ;;  %2103 = vmatprep.mubr.msk.f32.mxu0 %vm2585_vm1, %v2584_v0  ;;  %602 = vst.msk [vmem:[#allocation3 + $0x10] sm:$0xff] %vm595_vm2, %v2584_v0  ;;  %603 = vst.msk [vmem:[#allocation3 + $0x18] sm:$0xff] %vm595_vm2, %v2584_v0  ;;  %s2032_s23 = sshll.u32 %s582_s19, 1  ;;  %s1789_s10 = sshll.u32 %s3096_s7, 4  ;;  %s3124_s10 = int_to_ptr.vmem [resolvable:$true] %s1789_s10 }
  0xc8   : > { %2107 = vmatpush3.xpose.msk.msra.mxu1 %vm604_vm0, %v616_v10  ;;  %2108 = vmatprep.mubr.msk.f32.mxu1 %vm2585_vm1, %v2584_v0  ;;  %s590_s20 = scalar_lea.vmem %s3221_s3, %s2032_s23  ;;  %s3279_s15 = sld [smem:[#allocation33_spill]] }
  0xc9   : > { %2111 = vmatprep.subr.mxu0 %v2584_v0  ;;  %2116 = vmatprep.subr.mxu1 %v2584_v0  ;;  %v625_v14 = vld [vmem:[%s590_s20] sm:$0x3]  ;;  %s1761_s30 = scalar_lea.sflag [#allocation16], %s2927_s12  ;;  %s2449_s22 = scalar_lea.vmem %s3124_s10, 512 }
  0xca   : > { %2104 = vmatmul.mubr.msk.f32.vlgmr.msra.gmra.mrb[2].mxu0 %vm604_vm0, %v623_v11  ;;  %v626_v15 = vunpack.c.0.s8 %v625_v14  ;;  %p2450_p3 = scmp.ne.s32.totalorder %s3124_s10, %s2449_s22  ;;  %p3281_p11 = scmp.ne.s32.totalorder %s3255_s24, 0 }
  0xcb   : > { %2109 = vmatmul.mubr.msk.f32.vlgmr.msra.gmra.mrb[2].mxu1 %vm604_vm0, %v624_v12  ;;  %2113 = vmatprep.mubr.msk.f32.mxu0 %vm2585_vm1, %v2584_v0  ;;  %v934_v35 = vld [vmem:[#allocation2] sm:$0xff]  ;;  %v3027_v38 = vld [vmem:[#allocation2 + $0x8] sm:$0xff]  ;;  %s2589_s9 = smov [#allocation15]  }
  0xcc   : > { %2118 = vmatprep.mubr.msk.f32.mxu1 %vm2585_vm1, %v2584_v0  ;;  %v627_v16 = vcvt.s32.f32 %v626_v15  ;;  %v3029_v39 = vld [vmem:[#allocation2 + $0x10] sm:$0xff]  ;;  %v3036_v45 = vld [vmem:[#allocation2 + $0x18] sm:$0xff]  ;;  %2112 = vmatpush3.msra.mxu0 %v617_v51  ;;  %v1028_v51 = vld [vmem:[#allocation4] sm:$0xff]  ;;  %p2451_p5 = pnand %p2450_p3, %p3281_p11 }
  0xcd   : > { %2121 = vmatprep.subr.mxu0 %v2584_v0  ;;  %2117 = vmatpush3.msra.mxu1 %v618_v52 }
  0xce   : > { %v628_v17 = vmul.f32 -1e+09, %v627_v16  ;;  %2126 = vmatprep.subr.mxu1 %v2584_v0  ;;  %s3280_s26 = smov %s3279_s15  ;;  %s3130_s29 = scalar_lea.hbm %s3279_s15, %s2062_s1 }
  0xcf   : > { %p2452_p9 = pneg %p2451_p5 }
 0x199   : > { %v702_v18 = vpop.f32.mrb[0].mxu0  ;;  %v778_v19 = vpop.f32.mrb[0].mxu1 }
 0x19a   : > { %v703_v20 = vadd.f32 %v702_v18, %v628_v17  ;;  %v2095_v21 = vpop.f32.mrb[1].mxu0  ;;  %v779_v22 = vadd.f32 %v778_v19, %v628_v17  ;;  %v2100_v23 = vpop.f32.mrb[1].mxu1 }
 0x19b   : > { %v1404_v21 = vld [vmem:[#allocation13 + $0x8] sm:$0xff] }
 0x19c   : > { %v939_v24 = vsel %vm938_vm3, %v703_v20, -inf  ;;  %v942_v27 = vsel %vm938_vm3, %v779_v22, -inf }
 0x19d   : > { %940 = vmax.xlane.f32.xlu0 %v939_v24  ;;  %v854_v25 = vpop.f32.mrb[2].mxu0  ;;  %v999_v24 = vld [vmem:[#allocation3] sm:$0xff] }
 0x19e   : > { %v855_v26 = vadd.f32 %v854_v25, %v628_v17  ;;  %v2105_v28 = vpop.f32.mrb[3].mxu0  ;;  %v930_v29 = vpop.f32.mrb[2].mxu1 }
 0x19f   : > { %v931_v30 = vadd.f32 %v930_v29, %v628_v17  ;;  %v2110_v31 = vpop.f32.mrb[3].mxu1 }
 0x1a0   : > { %v945_v32 = vsel %vm938_vm3, %v855_v26, -inf  ;;  %v1001_v31 = vld [vmem:[#allocation3 + $0x10] sm:$0xff] }
 0x1a1   : > { %943 = vmax.xlane.f32.xlu0 %v942_v27  ;;  %946 = vmax.xlane.f32.xlu1 %v945_v32  ;;  %v948_v33 = vsel %vm938_vm3, %v931_v30, -inf  ;;  %v1000_v27 = vld [vmem:[#allocation3 + $0x8] sm:$0xff] }
 0x1a5   : > { %949 = vmax.xlane.f32.xlu1 %v948_v33 }
 0x22a   : > { %v941_v36 = vpop.xlane.xlu0 %940 }
 0x22b   : > { %v951_v37 = vmax.f32 %v934_v35, %v941_v36 }
 0x22d   : > { %v955_v40 = vsub.f32 %v934_v35, %v951_v37  ;;  %1356 = vst.msk [vmem:[#allocation2] sm:$0xff] %vm595_vm2, %v951_v37  ;;  %969 = vperm.xlu0 %2273, %v951_v37   ;;  %v1002_v35 = vld [vmem:[#allocation3 + $0x18] sm:$0xff] }
 0x22e   : > { %v944_v41 = vpop.xlane.xlu0 %943  ;;  %v947_v42 = vpop.xlane.xlu1 %946 }
 0x22f   : > { %v952_v43 = vmax.f32 %v3027_v38, %v944_v41  ;;  %v3034_v44 = vmax.f32 %v3029_v39, %v947_v42  ;;  %v959_v9 = vmul.f32 1.442695, %v955_v40 }
 0x231   : > { %v956_v46 = vsub.f32 %v3027_v38, %v952_v43  ;;  %1357 = vst.msk [vmem:[#allocation2 + $0x8] sm:$0xff] %vm595_vm2, %v952_v43  ;;  %974 = vperm.xlu1 %2274, %v952_v43   ;;  %v957_v47 = vsub.f32 %v3029_v39, %v3034_v44  ;;  %1358 = vst.msk [vmem:[#allocation2 + $0x10] sm:$0xff] %vm595_vm2, %v3034_v44 }
 0x232   : > { %v950_v48 = vpop.xlane.xlu1 %949 }
 0x233   : > { %v954_v49 = vmax.f32 %v3036_v45, %v950_v48  ;;  %v961_v13 = vmul.f32 1.442695, %v956_v46  ;;  %v963_v14 = vmul.f32 1.442695, %v957_v47  ;;  %v1406_v46 = vld [vmem:[#allocation13 + $0x18] sm:$0xff] }
 0x235   : > { %979 = vperm.xlu1 %2274, %v3034_v44   ;;  %v958_v50 = vsub.f32 %v3036_v45, %v954_v49  ;;  %1359 = vst.msk [vmem:[#allocation2 + $0x18] sm:$0xff] %vm595_vm2, %v954_v49  ;;  %v1405_v45 = vld [vmem:[#allocation13 + $0x10] sm:$0xff] }
 0x236   : > { %v2160_v47 = vpack.c.bf16 %v1406_v46, %v1405_v45  ;;  %v1713_v45 = vld [vmem:[%s2954_s5] sm:$0xff]  ;;  %s2453_s5 = sshll.u32 %s2589_s9, 4  ;;  %s2454_s5 = int_to_ptr.vmem [resolvable:$false] %s2453_s5 }
 0x237   : > { %v965_v16 = vmul.f32 1.442695, %v958_v50  ;;  %s2455_s19 = scalar_lea.vmem %s2454_s5, 1024  ;;  %p2456_p12 = scmp.lt.s32.totalorder %s3124_s10, %s2454_s5 }
 0x238   : > { %p2457_p7 = scmp.lt.s32.totalorder %s2455_s19, %s2449_s22 }
 0x239   : > { %984 = vperm.xlu1 %2274, %v954_v49  }
 0x23a   : > { %p2458_p1 = por %p2457_p7, %p2456_p12 }
 0x23c   : > { %p2459_p2 = pnand %p2458_p1, %p2452_p9 }
 0x2ac   : > { %v970_v53 = vpop.permute.xlu0 %969 }
 0x2ad   : > { %v987_v54 = vsub.f32 %v703_v20, %v970_v53  ;;  %v1403_v20 = vld [vmem:[#allocation13] sm:$0xff] }
 0x2ae   : > { %v2163_v23 = vpack.c.bf16 %v1404_v21, %v1403_v20 }
 0x2af   : > { %v991_v55 = vmul.f32 1.442695, %v987_v54 }
 0x2b0   : > { %v975_v56 = vpop.permute.xlu1 %974 }
 0x2b1   : > { %2275 = vpow2.f32 %v991_v55  ;;  %v988_v57 = vsub.f32 %v779_v22, %v975_v56  ;;  %v2588_v22 = vmov 0.0|0.0   ;;  %v1029_v55 = vld [vmem:[#allocation4 + $0x8] sm:$0xff] }
 0x2b3   : > { %v993_v58 = vmul.f32 1.442695, %v988_v57 }
 0x2b4   : > { %v980_v59 = vpop.permute.xlu1 %979 }
 0x2b5   : > { %2277 = vpow2.f32 %v993_v58  ;;  %v989_v60 = vsub.f32 %v855_v26, %v980_v59 }
 0x2b7   : > { %v995_v61 = vmul.f32 1.442695, %v989_v60 }
 0x2b8   : > { %v985_v62 = vpop.permute.xlu1 %984 }
 0x2b9   : > { %2279 = vpow2.f32 %v995_v61  ;;  %v990_v63 = vsub.f32 %v931_v30, %v985_v62  ;;  %v1030_v61 = vld [vmem:[#allocation4 + $0x10] sm:$0xff] }
 0x2bb   : > { %v3053_v2 = vpop.eup %2275  ;;  %v997_v3 = vmul.f32 1.442695, %v990_v63 }
 0x2bc   : > { %2114 = vmatmul.mubr.msk.f32.vlgmr.msra.gmra.mrb[4].mxu0 %vm938_vm3, %v3053_v2  ;;  %v1007_v4 = vsel %vm938_vm3, %v3053_v2, 0.0 }
 0x2bd   : > { %2281 = vpow2.f32 %v997_v3  ;;  %1008 = vadd.xlane.f32.xlu0 %v1007_v4  ;;  %2122 = vmatpush3.msra.mxu0 %v619_v1  ;;  %v1031_v4 = vld [vmem:[#allocation4 + $0x18] sm:$0xff] }
 0x2be   : > { %2123 = vmatprep.mubr.msk.f32.mxu0 %vm2585_vm1, %v2584_v0  ;;  %2283 = vpow2.f32 %v959_v9  ;;  %2159 = vmatprep.subr.bf16.mxu0 %v2588_v22 }
 0x2bf   : > { %v3062_v6 = vpop.eup %2277  ;;  %2285 = vpow2.f32 %v961_v13 }
 0x2c0   : > { %2119 = vmatmul.mubr.msk.f32.vlgmr.msra.gmra.mrb[4].mxu1 %vm938_vm3, %v3062_v6  ;;  %v1010_v7 = vsel %vm938_vm3, %v3062_v6, 0.0  ;;  %2287 = vpow2.f32 %v963_v14 }
 0x2c1   : > { %1011 = vadd.xlane.f32.xlu1 %v1010_v7  ;;  %2127 = vmatpush3.msra.mxu1 %v620_v5  ;;  %2289 = vpow2.f32 %v965_v16  ;;  %v1409_v16 = vld [vmem:[#allocation13 + $0x30] sm:$0xff] }
 0x2c2   : > { %2128 = vmatprep.mubr.msk.f32.mxu1 %vm2585_vm1, %v2584_v0  ;;  %2162 = vmatprep.subr.bf16.mxu1 %v2588_v22 }
 0x2c3   : > { %v3070_v8 = vpop.eup %2279 }
 0x2c4   : > { %2124 = vmatmul.mubr.msk.f32.vlgmr.msra.gmra.mrb[6].mxu0 %vm938_vm3, %v3070_v8  ;;  %v1013_v10 = vsel %vm938_vm3, %v3070_v8, 0.0 }
 0x2c5   : > { %1014 = vadd.xlane.f32.xlu1 %v1013_v10  ;;  %2135 = vmatprep.mubr.msk.f32.mxu0 %vm2585_vm1, %v2584_v0 }
 0x2c6   : > { %2161 = vmatpush3.bf16.msra.mxu0 %v2160_v47 }
 0x2c7   : > { %v3078_v11 = vpop.eup %2281  ;;  %2165 = vmatprep.subr.bf16.mxu0 %v2588_v22 }
 0x2c8   : > { %2129 = vmatmul.mubr.msk.f32.vlgmr.msra.gmra.mrb[6].mxu1 %vm938_vm3, %v3078_v11  ;;  %v1016_v12 = vsel %vm938_vm3, %v3078_v11, 0.0  ;;  %v2284_v15 = vpop.eup %2283 }
 0x2c9   : > { %1017 = vadd.xlane.f32.xlu1 %v1016_v12  ;;  %2142 = vmatprep.mubr.msk.f32.mxu1 %vm2585_vm1, %v2584_v0  ;;  %v2286_v17 = vpop.eup %2285  ;;  %v1003_v25 = vmul.f32 %v2284_v15, %v999_v24  ;;  %v1408_v24 = vld [vmem:[#allocation13 + $0x28] sm:$0xff] }
 0x2ca   : > { %v2288_v18 = vpop.eup %2287  ;;  %2164 = vmatpush3.bf16.msra.mxu1 %v2163_v23  ;;  %v1004_v29 = vmul.f32 %v2286_v17, %v1000_v27  ;;  %v1407_v23 = vld [vmem:[#allocation13 + $0x20] sm:$0xff] }
 0x2cb   : > { %v2290_v19 = vpop.eup %2289  ;;  %2168 = vmatprep.subr.bf16.mxu1 %v2588_v22  ;;  %v1005_v33 = vmul.f32 %v2288_v18, %v1001_v31  ;;  %v2166_v27 = vpack.c.bf16 %v1408_v24, %v1407_v23 }
 0x2cc   : > { %v1006_v38 = vmul.f32 %v2290_v19, %v1002_v35 }
 0x2d3   : > { %1034 = vperm.xlu0 %2273, %v2284_v15  }
 0x2da   : > { %1039 = vperm.xlu1 %2274, %v2286_v17   ;;  %v1410_v17 = vld [vmem:[#allocation13 + $0x38] sm:$0xff] }
 0x2db   : > { %v2169_v20 = vpack.c.bf16 %v1410_v17, %v1409_v16 }
 0x2de   : > { %1044 = vperm.xlu1 %2274, %v2288_v18  }
 0x2e2   : > { %1049 = vperm.xlu1 %2274, %v2290_v19  }
 0x34a   : > { %v1009_v26 = vpop.xlane.xlu0 %1008 }
 0x34b   : > { %v1019_v28 = vadd.f32 %v1009_v26, %v1003_v25 }
 0x34d   : > { %1024 = vst.msk [vmem:[#allocation3] sm:$0xff] %vm595_vm2, %v1019_v28 }
 0x34e   : > { %v1012_v30 = vpop.xlane.xlu1 %1011 }
 0x34f   : > { %v1020_v32 = vadd.f32 %v1012_v30, %v1004_v29 }
 0x351   : > { %1025 = vst.msk [vmem:[#allocation3 + $0x8] sm:$0xff] %vm595_vm2, %v1020_v32 }
 0x352   : > { %v1015_v34 = vpop.xlane.xlu1 %1014  ;;  %v1035_v52 = vpop.permute.xlu0 %1034 }
 0x353   : > { %v1021_v36 = vadd.f32 %v1015_v34, %v1005_v33  ;;  %v1052_v54 = vmul.f32 %v1035_v52, %v1028_v51 }
 0x354   : > { %v1363_v37 = vld [vmem:[#allocation3] sm:$0xff] }
 0x355   : > { %1026 = vst.msk [vmem:[#allocation3 + $0x10] sm:$0xff] %vm595_vm2, %v1021_v36  ;;  %2291 = vrcp.f32 %v1363_v37 }
 0x356   : > { %v1018_v39 = vpop.xlane.xlu1 %1017 }
 0x357   : > { %v1022_v40 = vadd.f32 %v1018_v39, %v1006_v38 }
 0x358   : > { %v1364_v41 = vld [vmem:[#allocation3 + $0x8] sm:$0xff] }
 0x359   : > { %1027 = vst.msk [vmem:[#allocation3 + $0x18] sm:$0xff] %vm595_vm2, %v1022_v40  ;;  %2293 = vrcp.f32 %v1364_v41 }
 0x35a   : > { %v1040_v53 = vpop.permute.xlu1 %1039 }
 0x35b   : > { %v1053_v60 = vmul.f32 %v1040_v53, %v1029_v55 }
 0x35c   : > { %v1365_v42 = vld [vmem:[#allocation3 + $0x10] sm:$0xff] }
 0x35d   : > { %2295 = vrcp.f32 %v1365_v42 }
 0x35e   : > { %v1045_v59 = vpop.permute.xlu1 %1044 }
 0x35f   : > { %v2292_v43 = vpop.eup %2291  ;;  %v1054_v3 = vmul.f32 %v1045_v59, %v1030_v61 }
 0x360   : > { %1381 = vperm.xlu0 %2273, %v2292_v43   ;;  %v1366_v44 = vld [vmem:[#allocation3 + $0x18] sm:$0xff]  ;;  %v2049_v43 = vld [vmem:[%s3224_s6] ss:$0 sm:$0xff] }
 0x361   : > { %2297 = vrcp.f32 %v1366_v44 }
 0x362   : > { %v1050_v5 = vpop.permute.xlu1 %1049 }
 0x363   : > { %v2294_v48 = vpop.eup %2293  ;;  %v1055_v12 = vmul.f32 %v1050_v5, %v1031_v4 }
 0x364   : > { %1386 = vperm.xlu1 %2274, %v2294_v48  }
 0x367   : > { %v2296_v49 = vpop.eup %2295 }
 0x368   : > { %1391 = vperm.xlu1 %2274, %v2296_v49  }
 0x36b   : > { %v2298_v50 = vpop.eup %2297 }
 0x36c   : > { %1396 = vperm.xlu0 %2273, %v2298_v50  }
 0x38f   : > { %v1125_v56 = vpop.f32.mrb[4].mxu0 }
 0x390   : > { %v1348_v57 = vadd.f32 %v1125_v56, %v1052_v54  ;;  %v2115_v58 = vpop.f32.mrb[5].mxu0 }
 0x392   : > { %1352 = vst.msk [vmem:[#allocation4] sm:$0xff] %vm604_vm0, %v1348_v57 }
 0x393   : > { %v1198_v62 = vpop.f32.mrb[4].mxu1 }
 0x394   : > { %v1349_v63 = vadd.f32 %v1198_v62, %v1053_v60  ;;  %v2120_v1 = vpop.f32.mrb[5].mxu1 }
 0x396   : > { %1353 = vst.msk [vmem:[#allocation4 + $0x8] sm:$0xff] %vm604_vm0, %v1349_v63 }
 0x397   : > { %v1271_v7 = vpop.f32.mrb[6].mxu0 }
 0x398   : > { %v1350_v9 = vadd.f32 %v1271_v7, %v1054_v3  ;;  %v2125_v10 = vpop.f32.mrb[7].mxu0 }
 0x399   : > { %v1375_v18 = vld [vmem:[#allocation4] sm:$0xff] }
 0x39a   : > { %1354 = vst.msk [vmem:[#allocation4 + $0x10] sm:$0xff] %vm604_vm0, %v1350_v9 }
 0x39b   : > { %v1344_v13 = vpop.f32.mrb[6].mxu1 }
 0x39c   : > { %v1351_v14 = vadd.f32 %v1344_v13, %v1055_v12  ;;  %v2130_v15 = vpop.f32.mrb[7].mxu1 }
 0x39d   : > { %v1376_v25 = vld [vmem:[#allocation4 + $0x8] sm:$0xff] }
 0x39e   : > { %1355 = vst.msk [vmem:[#allocation4 + $0x18] sm:$0xff] %vm604_vm0, %v1351_v14 }
 0x3a1   : > { %v1377_v30 = vld [vmem:[#allocation4 + $0x10] sm:$0xff] }
 0x3a5   : > { %v1378_v33 = vld [vmem:[#allocation4 + $0x18] sm:$0xff] }
 0x3df   : > { %v1382_v19 = vpop.permute.xlu0 %1381 }
 0x3e0   : > { %v1399_v21 = vmul.f32 %v1382_v19, %v1375_v18  ;;  %v1747_v22 = vmul.f32 %v3053_v2, %v1382_v19 }
 0x3e2   : > { %1751 = vst.msk [vmem:[%s3096_s7] sm:$0xff] %vm938_vm3, %v1747_v22  ;;  %2143 = vmatmul.mubr.msk.f32.vlgmr.msra.gmra.mrb[8].mxu1 %vm604_vm0, %v1399_v21 }
 0x3e3   : > { %v1387_v26 = vpop.permute.xlu1 %1386  ;;  %2170 = vmatpush3.bf16.msra.mxu1 %v2169_v20  ;;  %2156 = vmatprep.mubr.msk.f32.mxu1 %vm2585_vm1, %v2584_v0 }
 0x3e4   : > { %v1400_v28 = vmul.f32 %v1387_v26, %v1376_v25  ;;  %v1748_v2 = vmul.f32 %v3062_v6, %v1387_v26 }
 0x3e6   : > { %1752 = vst.msk [vmem:[%s3096_s7 + $0x8] sm:$0xff] %vm938_vm3, %v1748_v2  ;;  %2136 = vmatmul.mubr.msk.f32.vlgmr.msra.gmra.mrb[8].mxu0 %vm604_vm0, %v1400_v28 }
 0x3e7   : > { %v1392_v29 = vpop.permute.xlu1 %1391  ;;  %2167 = vmatpush3.bf16.msra.mxu0 %v2166_v27  ;;  %2149 = vmatprep.mubr.msk.f32.mxu0 %vm2585_vm1, %v2584_v0 }
 0x3e8   : > { %v1401_v31 = vmul.f32 %v1392_v29, %v1377_v30  ;;  %v1749_v32 = vmul.f32 %v3070_v8, %v1392_v29 }
 0x3ea   : > { %1753 = vst.msk [vmem:[%s3096_s7 + $0x10] sm:$0xff] %vm938_vm3, %v1749_v32  ;;  %2150 = vmatmul.mubr.msk.f32.vlgmr.msra.gmra.mrb[10].mxu0 %vm604_vm0, %v1401_v31 }
 0x3eb   : > { %v1397_v34 = vpop.permute.xlu0 %1396 }
 0x3ec   : > { %v1402_v6 = vmul.f32 %v1397_v34, %v1378_v33  ;;  %v1750_v35 = vmul.f32 %v3078_v11, %v1397_v34 }
 0x3ee   : > { %1754 = vst.msk [vmem:[%s3096_s7 + $0x18] sm:$0xff] %vm938_vm3, %v1750_v35  ;;  %2157 = vmatmul.mubr.msk.f32.vlgmr.msra.gmra.mrb[10].mxu1 %vm604_vm0, %v1402_v6 }
 0x4b5   : > { %v1553_v36 = vpop.f32.mrb[8].mxu1 }
 0x4b6   : > { %v2144_v37 = vpop.f32.mrb[9].mxu1 }
 0x4b9   : > { %v1480_v0 = vpop.f32.mrb[8].mxu0 }
 0x4ba   : > { %v1554_v38 = vadd.f32 %v1553_v36, %v1480_v0  ;;  %v2137_v39 = vpop.f32.mrb[9].mxu0 }
 0x4bd   : > { %v1626_v8 = vpop.f32.mrb[10].mxu0 }
 0x4be   : > { %v1630_v40 = vadd.f32 %v1626_v8, %v1554_v38  ;;  %v2151_v41 = vpop.f32.mrb[11].mxu0 }
 0x4c1   : > { %v1700_v42 = vpop.f32.mrb[10].mxu1 }
 0x4c2   : > { %v1704_v44 = vadd.f32 %v1700_v42, %v1630_v40  ;;  %v2158_v11 = vpop.f32.mrb[11].mxu1 }
 0x4c4   : > { %v1712_v46 = vadd.f32 %v2049_v43, %v1704_v44 }
 0x4c6   : > { %v1714_v47 = vadd.f32 %v1713_v45, %v1712_v46 }
 0x4c8   : > { %v1716_v48 = vsel %vm1715_vm4, %v1714_v47, 0.0 }
 0x4c9   : > { %1717 = vadd.xlane.f32.xlu1 %v1716_v48 }
 0x556   : > { %v1718_v49 = vpop.xlane.xlu1 %1717 }
 0x557   : > { %v1720_v50 = vmul.f32 0.03125, %v1718_v49 }
 0x559   : > { %v1721_v51 = vsub.f32 %v1714_v47, %v1720_v50 }
 0x55b   : > { %v1722_v52 = vmul.f32 %v1721_v51, %v1721_v51 }
 0x55d   : > { %v1723_v53 = vsel %vm1715_vm4, %v1722_v52, 0.0 }
 0x55e   : > { %1724 = vadd.xlane.f32.xlu0 %v1723_v53 }
 0x55f   : > { %2462 = shalt.err (!%p2459_p2)
}
 0x560   : > { %s2463_s23 = scalar_lea.hbm %s3130_s29, 512  ;;  %s2467_s20 = scalar_lea.hbm %s3280_s26, 1024 }
 0x561   : > { %p2464_p6 = scmp.ne.s32.totalorder %s3130_s29, %s2463_s23  ;;  %p2468_p0 = scmp.lt.u32.totalorder %s3130_s29, %s3280_s26 }
 0x562   : > { %p2469_p10 = scmp.lt.u32.totalorder %s2467_s20, %s2463_s23  ;;  %p2471_p3 = scmp.lt.u32.totalorder %s2463_s23, %s3130_s29 }
 0x563   : > { %p2465_p4 = pnand %p2464_p6, %p3281_p11 }
 0x564   : > { %p2470_p13 = por %p2469_p10, %p2468_p0 }
 0x565   : > { %p2466_p8 = pneg %p2465_p4 }
 0x566   : > { %p2472_p5 = por %p2471_p3, %p2470_p13 }
 0x568   : > { %p2473_p9 = pnand %p2472_p5, %p2466_p8 }
 0x56a   : > { %2476 = shalt.err (!%p2473_p9)
}
 0x56b   : > { %s2590_s8 = smov 128   ;;  %s2591_s1 = smov 8  }
 0x56c   : > { %2184 = dma.vmem_to_hbm [thread:$0]  (%p3281_p11), %s3124_s10, 512, %s3130_s29, %s1761_s30, %s2590_s8, %s2590_s8, %s2591_s1  }
 0x56d   : > { %s3282_s15 = sld [smem:[#allocation30_spill]]  ;;  %s3283_s5 = sld [smem:[#allocation31_spill]] }
 0x56e   : > { %s2054_s19 = sshll.u32 %s2567_s16, 7  ;;  %s573_s23 = scalar_lea.vmem [#allocation14], %s2028_s21 }
 0x56f   : > { %s1775_s10 = sshll.u32 %s573_s23, 4  ;;  %s3284_s11 = sld [smem:[#allocation32_spill]]  ;;  %s3170_s10 = int_to_ptr.vmem [resolvable:$true] %s1775_s10 }
 0x570   : > { %s1756_s20 = scalar_lea.sflag [#allocation7], %s2927_s12  ;;  %s2477_s7 = scalar_lea.vmem %s3170_s10, 128 }
 0x571   : > { %p2478_p12 = scmp.ne.s32.totalorder %s3170_s10, %s2477_s7  ;;  %s2592_s16 = smov [#allocation14]  }
 0x572   : > { %s2481_s21 = sshll.u32 %s2592_s16, 4  ;;  %s2482_s21 = int_to_ptr.vmem [resolvable:$false] %s2481_s21 }
 0x573   : > { %v2050_v58 = vld [vmem:[%s3282_s15] ss:$0 sm:$0xff]  ;;  %p2479_p7 = pnand %p2478_p12, %p3281_p11  ;;  %s2483_s13 = scalar_lea.vmem %s2482_s21, 256 }
 0x574   : > { %v2051_v60 = vld [vmem:[%s3283_s5] ss:$0 sm:$0xff]  ;;  %p2484_p2 = scmp.lt.s32.totalorder %s3170_s10, %s2482_s21  ;;  %p2485_p6 = scmp.lt.s32.totalorder %s2483_s13, %s2477_s7 }
 0x575   : > { %s3168_s27 = scalar_lea.hbm %s3284_s11, %s2054_s19  ;;  %p2480_p1 = pneg %p2479_p7 }
 0x576   : > { %p2486_p4 = por %p2485_p6, %p2484_p2 }
 0x578   : > { %p2487_p8 = pnand %p2486_p4, %p2480_p1 }
 0x5eb   : > { %v1725_v54 = vpop.xlane.xlu0 %1724 }
 0x5ec   : > { %v1726_v55 = vmul.f32 0.03125, %v1725_v54 }
 0x5ee   : > { %v1727_v56 = vadd.f32 1e-05, %v1726_v55 }
 0x5f0   : > { %2299 = vrsqrt.f32 %v1727_v56 }
 0x5fa   : > { %v2300_v57 = vpop.eup %2299 }
 0x5fb   : > { %v1729_v59 = vmul.f32 %v2300_v57, %v1721_v51 }
 0x5fd   : > { %v1737_v61 = vmul.f32 %v2050_v58, %v1729_v59 }
 0x5ff   : > { %v1745_v62 = vadd.f32 %v2051_v60, %v1737_v61 }
 0x601   : > { %1746 = vst.msk [vmem:[%s573_s23] sm:$0xff] %vm1715_vm4, %v1745_v62 }
 0x602   : > { %2490 = shalt.err (!%p2487_p8)
}
 0x603   : > { %s2491_s12 = scalar_lea.hbm %s3168_s27, 128  ;;  %s2495_s28 = scalar_lea.hbm %s3284_s11, 256 }
 0x604   : > { %p2492_p0 = scmp.ne.s32.totalorder %s3168_s27, %s2491_s12  ;;  %p2496_p3 = scmp.lt.u32.totalorder %s3168_s27, %s3284_s11 }
 0x605   : > { %p2497_p5 = scmp.lt.u32.totalorder %s2495_s28, %s2491_s12  ;;  %p2499_p12 = scmp.lt.u32.totalorder %s2491_s12, %s3168_s27 }
 0x606   : > { %p2493_p10 = pnand %p2492_p0, %p3281_p11 }
 0x607   : > { %p2498_p9 = por %p2497_p5, %p2496_p3 }
 0x608   : > { %p2494_p13 = pneg %p2493_p10 }
 0x609   : > { %p2500_p7 = por %p2499_p12, %p2498_p9 }
 0x60b   : > { %p2501_p1 = pnand %p2500_p7, %p2494_p13 }
 0x60d   : > { %2504 = shalt.err (!%p2501_p1)
}
 0x60e   : > { %2183 = dma.vmem_to_hbm [thread:$0]  (%p3281_p11), %s3170_s10, 128, %s3168_s27, %s1756_s20  }
 0x60f PF: > { %s3285_s22 = sld [smem:[#allocation23_spill]]  ;;  %s3286_s9 = sld [smem:[#allocation25_spill]] }
 0x610   : > { %p3288_p6 = scmp.ge.s32.totalorder %s2575_s18, 2 }
 0x615   : > { %s1804_s5 = sand.u32 1, %s3285_s22   ;;  %p3287_p2 = scmp.ne.s32.totalorder %s3286_s9, 0 }
 0x616   : > { %s1805_s19 = scalar_lea.sflag [#allocation7], %s1804_s5 }
 0x617   : > { %p2205_p4 = pnand %p3288_p6, %p3287_p2 }
 0x619   : > { %2546 = dma.done.wait (!%p2205_p4), %s1805_s19, 128  }
 0x61a   : > { %2548 = vsyncadd (!%p2205_p4), %s1805_s19, 4294967168  ;;  %s1814_s23 = scalar_lea.sflag [#allocation16], %s1804_s5 }
 0x61b   : > { %2550 = dma.done.wait (!%p2205_p4), %s1814_s23, 512  }
 0x61c   : > { %2552 = vsyncadd (!%p2205_p4), %s1814_s23, 4294966784  ;;  %s36_s18 = sadd.s32 1, %s2575_s18   ;;  %s3289_s24 = sld [smem:[#allocation24_spill]] }
 0x61d   : > { %p33_p8 = scmp.ge.s32.totalorder %s36_s18, 4   ;;  %s3290_s15 = sld [smem:[#allocation27_spill]] }
 0x61e   : > { %s3291_s10 = sld [smem:[#allocation26_spill]]  ;;  %s3292_s13 = smov %s2559_s14 }
 0x61f   : > { %s3294_s16 = smov %s2571_s17  ;;  %35 = sbr.rel (!%p33_p8) target bundleno = 19 (0x13), region = 170 }
 0x622   : > { %s3293_s14 = smov %s3289_s24 }
 0x624   : > { %s3295_s17 = smov %s3291_s10 }
 0x626   :  { %1819 = vsyncpa [#allocation6], 1 }
 0x627   :  { %1821 = vsyncpa [#allocation6 + $0x1], 1 }
 0x628   :  { %1822 = vsyncpa [#allocation9], 1 }
 0x629   :  { %1824 = vsyncpa [#allocation9 + $0x1], 1 }
 0x62a   :  { %1825 = vsyncpa [#allocation12], 1 }
 0x62b   :  { %1827 = vsyncpa [#allocation12 + $0x1], 1 }
 0x62c   :  { %1828 = vsyncpa [#allocation7], 1 }
 0x62d   :  { %1830 = vsyncpa [#allocation7 + $0x1], 1 }
 0x62e   :  { %1831 = vsyncpa [#allocation16], 1 }
 0x62f   :  { %1833 = vsyncpa [#allocation16 + $0x1], 1 }

</bundles_post_ra>
